<compile_context>
chip_gen: v7x
topology: tpu7x:2x2x1
jax: 0.10.0
libtpu: 0.0.40
codegen_flags: <defaults>
</compile_context>

<pallas_src>
import functools

import jax
import jax.numpy as jnp
from jax.experimental import pallas as pl
from jax.experimental.pallas import tpu as pltpu


def _round_up(x, m):
    return ((x + m - 1) // m) * m


def conv2d_size_out(size, kernel_size=5, stride=2):
    return (size - (kernel_size - 1) - 1) // stride + 1


# ---------------------------------------------------------------------------
# Pallas kernels
# ---------------------------------------------------------------------------
def _matmul_bias_kernel(x_ref, w_ref, shift_ref, o_ref, *, apply_relu):
    # bf16 x bf16 -> f32 accumulate on the MXU, f32 epilogue, one cast at store.
    y = jnp.dot(x_ref[...], w_ref[...], preferred_element_type=jnp.float32)
    y = y + shift_ref[...]                     # (1, N) broadcast over rows
    if apply_relu:
        y = jnp.maximum(y, 0.0)
    o_ref[...] = y.astype(o_ref.dtype)


def _conv3_head_kernel(a_ref, w3_ref, s3_ref, wh_ref, bh_ref, o_ref):
    # conv3 (as a flattened-input matmul) + ReLU + Linear head, fully in VMEM.
    y3 = jnp.dot(a_ref[...], w3_ref[...], preferred_element_type=jnp.float32)
    y3 = jnp.maximum(y3 + s3_ref[...], 0.0)
    out = jnp.dot(y3.astype(wh_ref.dtype), wh_ref[...],
                  preferred_element_type=jnp.float32)
    o_ref[...] = out + bh_ref[...]


# ---------------------------------------------------------------------------
# Pallas wrappers
# ---------------------------------------------------------------------------
def fused_matmul_bias(x, w, shift, *, apply_relu, out_dtype, row_blocks=1):
    """relu?(x @ w + shift). x:(M,K) bf16, w:(K,N) bf16, shift:(1,N) f32."""
    M, K = x.shape
    Kw, N = w.shape
    assert Kw == K and N % 128 == 0
    kernel = functools.partial(_matmul_bias_kernel, apply_relu=apply_relu)

    if row_blocks <= 1:
        # Single block: full-dim BlockSpecs (legal for any M/K), one grid step,
        # no row padding, no HBM K-pad.
        return pl.pallas_call(
            kernel,
            out_shape=jax.ShapeDtypeStruct((M, N), out_dtype),
        )(x, w, shift)

    # Multi-block path: 16-aligned row tiles (bf16 packs 2 rows / sublane),
    # "parallel" so a v7x megacore can put one block on each TensorCore.
    tm = _round_up((M + row_blocks - 1) // row_blocks, 16)
    Mp = tm * row_blocks
    if Mp != M:
        x = jnp.pad(x, ((0, Mp - M), (0, 0)))
    out = pl.pallas_call(
        kernel,
        out_shape=jax.ShapeDtypeStruct((Mp, N), out_dtype),
        grid=(row_blocks,),
        in_specs=[
            pl.BlockSpec((tm, K), lambda i: (i, 0)),   # row tile of patches
            pl.BlockSpec((K, N), lambda i: (0, 0)),    # folded weight, resident
            pl.BlockSpec((1, N), lambda i: (0, 0)),    # folded bias, resident
        ],
        out_specs=pl.BlockSpec((tm, N), lambda i: (i, 0)),
        compiler_params=pltpu.CompilerParams(
            dimension_semantics=("parallel",)),
    )(x, w, shift)
    return out[:M] if Mp != M else out


def conv3_head(a2, w3, s3, wh, bh):
    """Fused conv3+bn3+relu+head on the per-batch flattened conv2 output."""
    M = a2.shape[0]
    N = wh.shape[1]
    return pl.pallas_call(
        _conv3_head_kernel,
        out_shape=jax.ShapeDtypeStruct((M, N), jnp.float32),
    )(a2, w3, s3, wh, bh)


# ---------------------------------------------------------------------------
# JAX glue: NHWC im2col (static strided slices; fused by XLA under jit)
# ---------------------------------------------------------------------------
def im2col_nhwc(x, kh, kw, stride):
    """x: (N,H,W,C) -> patches (N*Ho*Wo, kh*kw*C), K flattened as (kh, kw, C)."""
    n, h, w, c = x.shape
    ho = (h - kh) // stride + 1
    wo = (w - kw) // stride + 1
    cols = []
    for i in range(kh):
        for j in range(kw):
            cols.append(x[:, i:i + stride * ho:stride, j:j + stride * wo:stride, :])
    p = jnp.stack(cols, axis=3)                   # (N, Ho, Wo, kh*kw, C)
    return p.reshape(n * ho * wo, kh * kw * c), n, ho, wo


# ---------------------------------------------------------------------------
# Deterministic parameter construction (matches the PyTorch module's shapes)
# ---------------------------------------------------------------------------
def init_params(key, height, width, output_size):
    convw = conv2d_size_out(conv2d_size_out(conv2d_size_out(width)))
    convh = conv2d_size_out(conv2d_size_out(conv2d_size_out(height)))
    linear_input_size = convw * convh * 32

    keys = jax.random.split(key, 16)
    params = {}
    conv_cfg = [("conv1", 3, 16), ("conv2", 16, 32), ("conv3", 32, 32)]
    for idx, (name, cin, cout) in enumerate(conv_cfg):
        kw_, kb_, kg_, kbeta_ = jax.random.split(keys[idx], 4)
        params[name] = {
            "w": 0.1 * jax.random.normal(kw_, (cout, cin, 5, 5), jnp.float32),
            "b": 0.1 * jax.random.normal(kb_, (cout,), jnp.float32),
            # eval-mode BatchNorm with deterministic synthetic running stats
            "gamma": jax.random.uniform(kg_, (cout,), jnp.float32, 0.5, 1.5),
            "beta": 0.1 * jax.random.normal(kbeta_, (cout,), jnp.float32),
            "mean": 0.05 * jax.random.normal(keys[8 + idx], (cout,), jnp.float32),
            "var": jax.random.uniform(keys[12 + idx], (cout,), jnp.float32, 0.5, 1.5),
        }
    params["head"] = {
        "w": 0.1 * jax.random.normal(keys[3], (output_size, linear_input_size),
                                     jnp.float32),
        "b": 0.1 * jax.random.normal(keys[4], (output_size,), jnp.float32),
    }
    return params


# ---------------------------------------------------------------------------
# One-time parameter preparation: fold BN, reorder, pad Cout to 128, cast bf16
# ---------------------------------------------------------------------------
def prepare_params(params, height, width, eps=1e-5):
    prep = {}
    for name in ("conv1", "conv2"):
        p = params[name]
        cout, cin, kh, kw = p["w"].shape
        scale = p["gamma"] / jnp.sqrt(p["var"] + eps)
        shift = p["beta"] + scale * (p["b"] - p["mean"])
        # (cout,cin,kh,kw) -> (kh,kw,cin,cout) -> (K, cout); fold BN scale in.
        wmat = p["w"].transpose(2, 3, 1, 0).reshape(kh * kw * cin, cout) * scale
        npad = _round_up(cout, 128)
        wmat = jnp.pad(wmat, ((0, 0), (0, npad - cout))).astype(jnp.bfloat16)
        shift = jnp.pad(shift, (0, npad - cout)).reshape(1, npad).astype(jnp.float32)
        prep[name] = dict(w=wmat, shift=shift, cout=cout)

    # --- conv3 + head, fused ------------------------------------------------
    # Fold the stride-2 patch-selection matrix of conv3 into its (BN-folded)
    # weight so conv3 becomes a matmul on the NHWC-flattened conv2 output.
    p3 = params["conv3"]
    cout3, cin3, kh, kw = p3["w"].shape
    scale3 = p3["gamma"] / jnp.sqrt(p3["var"] + eps)
    shift3 = p3["beta"] + scale3 * (p3["b"] - p3["mean"])
    w3 = p3["w"].transpose(2, 3, 1, 0) * scale3        # (kh, kw, cin3, cout3)

    stride = 2
    h_in = conv2d_size_out(conv2d_size_out(height))    # conv2 output spatial
    w_in = conv2d_size_out(conv2d_size_out(width))
    h_out = conv2d_size_out(h_in)                      # conv3 output spatial
    w_out = conv2d_size_out(w_in)

    w3big = jnp.zeros((h_in, w_in, cin3, h_out, w_out, cout3), jnp.float32)
    for yo in range(h_out):
        for xo in range(w_out):
            w3big = w3big.at[stride * yo:stride * yo + kh,
                             stride * xo:stride * xo + kw, :, yo, xo, :].set(w3)
    ncols = h_out * w_out * cout3                      # NHWC flatten of conv3 out
    ncolsp = _round_up(ncols, 128)
    kflat = h_in * w_in * cin3                         # NHWC flatten of conv2 out
    w3big = w3big.reshape(kflat, ncols)
    w3big = jnp.pad(w3big, ((0, 0), (0, ncolsp - ncols))).astype(jnp.bfloat16)
    s3 = jnp.tile(shift3, h_out * w_out)
    s3 = jnp.pad(s3, (0, ncolsp - ncols)).reshape(1, ncolsp).astype(jnp.float32)

    hp = params["head"]
    nout, nin = hp["w"].shape
    assert nin == ncols
    # permute head columns from PyTorch (C,H,W) flatten to NHWC (H,W,C) flatten
    wh = hp["w"].reshape(nout, cout3, h_out, w_out).transpose(0, 2, 3, 1)
    wh = wh.reshape(nout, ncols).T                     # (ncols, nout)
    noutp = _round_up(nout, 128)
    wh = jnp.pad(wh, ((0, ncolsp - ncols), (0, noutp - nout))).astype(jnp.bfloat16)
    bh = jnp.pad(hp["b"], (0, noutp - nout)).reshape(1, noutp).astype(jnp.float32)

    prep["conv3_head"] = dict(w3=w3big, s3=s3, wh=wh, bh=bh,
                              nout=nout, kflat=kflat)
    return prep


# ---------------------------------------------------------------------------
# Forward pass: conv1 -> conv2 -> fused(conv3 + head), fully jitted
# ---------------------------------------------------------------------------
def make_forward(params, height, width):
    prep = prepare_params(params, height, width)
    c1, c2, c3h = prep["conv1"], prep["conv2"], prep["conv3_head"]

    def _forward(x):
        # NCHW -> NHWC + bf16 cast once, on the small un-expanded input.
        h = jnp.transpose(x, (0, 2, 3, 1)).astype(jnp.bfloat16)

        # conv1 + bn1 + relu (bf16 out; 2 parallel row blocks for v7x megacore)
        p1, n, ho1, wo1 = im2col_nhwc(h, 5, 5, 2)
        y1 = fused_matmul_bias(p1, c1["w"], c1["shift"], apply_relu=True,
                               out_dtype=jnp.bfloat16,
                               row_blocks=2 if p1.shape[0] >= 256 else 1)
        h1 = y1[:, :c1["cout"]].reshape(n, ho1, wo1, c1["cout"])

        # conv2 + bn2 + relu (single block; M is tiny)
        p2, n, ho2, wo2 = im2col_nhwc(h1, 5, 5, 2)
        y2 = fused_matmul_bias(p2, c2["w"], c2["shift"], apply_relu=True,
                               out_dtype=jnp.bfloat16,
                               row_blocks=2 if p2.shape[0] >= 256 else 1)

        # NHWC-flatten conv2 output per batch; feed the fused conv3+head kernel.
        a2 = y2[:, :c2["cout"]].reshape(n, ho2 * wo2 * c2["cout"])
        assert a2.shape[1] == c3h["kflat"]
        out = conv3_head(a2, c3h["w3"], c3h["s3"], c3h["wh"], c3h["bh"])
        return out[:, :c3h["nout"]]

    # TODO(synk): conv1/conv2 could also be pulled into the fused kernel if the
    # stride-2 window gather were done on VMEM-resident activations in-kernel;
    # left as jitted XLA glue (strided-row gathers lower poorly in Mosaic).
    return jax.jit(_forward)


# ---------------------------------------------------------------------------
# Pure-JAX f32 reference (independent path: explicit BN, PyTorch CHW flatten)
# ---------------------------------------------------------------------------
def reference_forward(params, x, eps=1e-5):
    h = jnp.transpose(x, (0, 2, 3, 1)).astype(jnp.float32)
    for name in ("conv1", "conv2", "conv3"):
        p = params[name]
        cout, cin, kh, kw = p["w"].shape
        wmat = p["w"].transpose(2, 3, 1, 0).reshape(kh * kw * cin, cout)
        patches, n, ho, wo = im2col_nhwc(h, kh, kw, 2)
        y = patches @ wmat + p["b"]
        y = (y - p["mean"]) / jnp.sqrt(p["var"] + eps) * p["gamma"] + p["beta"]
        h = jnp.maximum(y, 0.0).reshape(n, ho, wo, cout)
    flat_chw = jnp.transpose(h, (0, 3, 1, 2)).reshape(h.shape[0], -1)
    return flat_chw @ params["head"]["w"].T + params["head"]["b"]


if __name__ == "__main__":
    height, width, output_size = 40, 40, 4
    batch = 2

    key = jax.random.PRNGKey(0)
    k_params, k_x = jax.random.split(key)
    params = init_params(k_params, height, width, output_size)
    x = jax.random.normal(k_x, (batch, 3, height, width), jnp.float32)

    forward = make_forward(params, height, width)
    y = jax.block_until_ready(forward(x))

    assert y.shape == (batch, output_size), y.shape
    assert bool(jnp.all(jnp.isfinite(y)))

    # bf16 MXU inputs with f32 accumulation => ~1e-2 relative deviation budget.
    y_ref = reference_forward(params, x)
    denom = float(jnp.max(jnp.abs(y_ref))) + 0.1
    err = float(jnp.max(jnp.abs(y - y_ref))) / denom
    assert err < 0.075, f"numerical mismatch vs f32 reference: {err}"

    print("KERNEL_OK")
</pallas_src>

<mosaic_0001>
module attributes {stable_mosaic.version = 11 : i64} {
  func.func @_matmul_bias_kernel(%arg0: i32, %arg1: memref<336x75xbf16, #tpu.memory_space<vmem>>, %arg2: memref<75x128xbf16, #tpu.memory_space<vmem>>, %arg3: memref<1x128xf32, #tpu.memory_space<vmem>>, %arg4: memref<336x128xbf16, #tpu.memory_space<vmem>>) attributes {dimension_semantics = [#tpu.dimension_semantics<parallel>], iteration_bounds = array<i64: 2>, scalar_prefetch = 0 : i64, scratch_operands = 0 : i64, tpu.core_type = #tpu.core_type<tc>, window_params = [{transform_indices = @transform_0, window_bounds = array<i64: 336, 75>}, {pipeline_mode = #tpu.pipeline_mode<synchronous>, transform_indices = @transform_1, window_bounds = array<i64: 75, 128>}, {pipeline_mode = #tpu.pipeline_mode<synchronous>, transform_indices = @transform_2, window_bounds = array<i64: 1, 128>}, {transform_indices = @transform_3, window_bounds = array<i64: 336, 128>}]} {
    %c0 = arith.constant 0 : index
    %c0_0 = arith.constant 0 : index
    %0 = vector.load %arg1[%c0, %c0_0] : memref<336x75xbf16, #tpu.memory_space<vmem>>, vector<336x75xbf16>
    %c0_1 = arith.constant 0 : index
    %c0_2 = arith.constant 0 : index
    %1 = vector.load %arg2[%c0_1, %c0_2] : memref<75x128xbf16, #tpu.memory_space<vmem>>, vector<75x128xbf16>
    %cst = arith.constant dense<0.000000e+00> : vector<336x128xf32>
    %2 = tpu.matmul %0, %1, %cst {dimension_numbers = #tpu.dot_dimension_numbers<[1], [0], [0], [1], [0, 0, 1, 1], [], []>} : vector<336x75xbf16>, vector<75x128xbf16>, vector<336x128xf32> -> vector<336x128xf32>
    %c0_3 = arith.constant 0 : index
    %c0_4 = arith.constant 0 : index
    %3 = vector.load %arg3[%c0_3, %c0_4] : memref<1x128xf32, #tpu.memory_space<vmem>>, vector<1x128xf32>
    %4 = vector.broadcast %3 : vector<1x128xf32> to vector<336x128xf32>
    %5 = arith.addf %2, %4 : vector<336x128xf32>
    %cst_5 = arith.constant 0.000000e+00 : f32
    %6 = vector.broadcast %cst_5 : f32 to vector<336x128xf32>
    %7 = arith.maximumf %5, %6 : vector<336x128xf32>
    %8 = arith.truncf %7 : vector<336x128xf32> to vector<336x128xbf16>
    %c0_6 = arith.constant 0 : index
    %c0_7 = arith.constant 0 : index
    %9 = vector.load %arg4[%c0_6, %c0_7] : memref<336x128xbf16, #tpu.memory_space<vmem>>, vector<336x128xbf16>
    tpu.vector_store %arg4[%c0_6, %c0_7], %8 {strides = array<i32>} : memref<336x128xbf16, #tpu.memory_space<vmem>>, vector<336x128xbf16>,
    return
  }
  func.func @transform_0(%arg0: i32) -> (i32, i32) {
    %c0_i32 = arith.constant 0 : i32
    %c0_i32_0 = arith.constant 0 : i32
    return %arg0, %c0_i32 : i32, i32
  }
  func.func @transform_1(%arg0: i32) -> (i32, i32) {
    %c0_i32 = arith.constant 0 : i32
    %c0_i32_0 = arith.constant 0 : i32
    %c0_i32_1 = arith.constant 0 : i32
    return %c0_i32, %c0_i32_0 : i32, i32
  }
  func.func @transform_2(%arg0: i32) -> (i32, i32) {
    %c0_i32 = arith.constant 0 : i32
    %c0_i32_0 = arith.constant 0 : i32
    %c0_i32_1 = arith.constant 0 : i32
    return %c0_i32, %c0_i32_0 : i32, i32
  }
  func.func @transform_3(%arg0: i32) -> (i32, i32) {
    %c0_i32 = arith.constant 0 : i32
    %c0_i32_0 = arith.constant 0 : i32
    return %arg0, %c0_i32 : i32, i32
  }
}

module attributes {stable_mosaic.version = 11 : i64} {
  func.func @_matmul_bias_kernel(%arg0: memref<98x400xbf16, #tpu.memory_space<vmem>>, %arg1: memref<400x128xbf16, #tpu.memory_space<vmem>>, %arg2: memref<1x128xf32, #tpu.memory_space<vmem>>, %arg3: memref<98x128xbf16, #tpu.memory_space<vmem>>) attributes {dimension_semantics = [], scalar_prefetch = 0 : i64, scratch_operands = 0 : i64, tpu.core_type = #tpu.core_type<tc>} {
    %c0 = arith.constant 0 : index
    %c0_0 = arith.constant 0 : index
    %0 = vector.load %arg0[%c0, %c0_0] : memref<98x400xbf16, #tpu.memory_space<vmem>>, vector<98x400xbf16>
    %c0_1 = arith.constant 0 : index
    %c0_2 = arith.constant 0 : index
    %1 = vector.load %arg1[%c0_1, %c0_2] : memref<400x128xbf16, #tpu.memory_space<vmem>>, vector<400x128xbf16>
    %cst = arith.constant dense<0.000000e+00> : vector<98x128xf32>
    %2 = tpu.matmul %0, %1, %cst {dimension_numbers = #tpu.dot_dimension_numbers<[1], [0], [0], [1], [0, 0, 1, 1], [], []>} : vector<98x400xbf16>, vector<400x128xbf16>, vector<98x128xf32> -> vector<98x128xf32>
    %c0_3 = arith.constant 0 : index
    %c0_4 = arith.constant 0 : index
    %3 = vector.load %arg2[%c0_3, %c0_4] : memref<1x128xf32, #tpu.memory_space<vmem>>, vector<1x128xf32>
    %4 = vector.broadcast %3 : vector<1x128xf32> to vector<98x128xf32>
    %5 = arith.addf %2, %4 : vector<98x128xf32>
    %cst_5 = arith.constant 0.000000e+00 : f32
    %6 = vector.broadcast %cst_5 : f32 to vector<98x128xf32>
    %7 = arith.maximumf %5, %6 : vector<98x128xf32>
    %8 = arith.truncf %7 : vector<98x128xf32> to vector<98x128xbf16>
    %c0_6 = arith.constant 0 : index
    %c0_7 = arith.constant 0 : index
    %9 = vector.load %arg3[%c0_6, %c0_7] : memref<98x128xbf16, #tpu.memory_space<vmem>>, vector<98x128xbf16>
    tpu.vector_store %arg3[%c0_6, %c0_7], %8 {strides = array<i32>} : memref<98x128xbf16, #tpu.memory_space<vmem>>, vector<98x128xbf16>,
    return
  }
}

module attributes {stable_mosaic.version = 11 : i64} {
  func.func @_conv3_head_kernel(%arg0: memref<2x1568xbf16, #tpu.memory_space<vmem>>, %arg1: memref<1568x128xbf16, #tpu.memory_space<vmem>>, %arg2: memref<1x128xf32, #tpu.memory_space<vmem>>, %arg3: memref<128x128xbf16, #tpu.memory_space<vmem>>, %arg4: memref<1x128xf32, #tpu.memory_space<vmem>>, %arg5: memref<2x128xf32, #tpu.memory_space<vmem>>) attributes {dimension_semantics = [], scalar_prefetch = 0 : i64, scratch_operands = 0 : i64, tpu.core_type = #tpu.core_type<tc>} {
    %c0 = arith.constant 0 : index
    %c0_0 = arith.constant 0 : index
    %0 = vector.load %arg0[%c0, %c0_0] : memref<2x1568xbf16, #tpu.memory_space<vmem>>, vector<2x1568xbf16>
    %c0_1 = arith.constant 0 : index
    %c0_2 = arith.constant 0 : index
    %1 = vector.load %arg1[%c0_1, %c0_2] : memref<1568x128xbf16, #tpu.memory_space<vmem>>, vector<1568x128xbf16>
    %cst = arith.constant dense<0.000000e+00> : vector<2x128xf32>
    %2 = tpu.matmul %0, %1, %cst {dimension_numbers = #tpu.dot_dimension_numbers<[1], [0], [0], [1], [0, 0, 1, 1], [], []>} : vector<2x1568xbf16>, vector<1568x128xbf16>, vector<2x128xf32> -> vector<2x128xf32>
    %c0_3 = arith.constant 0 : index
    %c0_4 = arith.constant 0 : index
    %3 = vector.load %arg2[%c0_3, %c0_4] : memref<1x128xf32, #tpu.memory_space<vmem>>, vector<1x128xf32>
    %4 = vector.broadcast %3 : vector<1x128xf32> to vector<2x128xf32>
    %5 = arith.addf %2, %4 : vector<2x128xf32>
    %cst_5 = arith.constant 0.000000e+00 : f32
    %6 = vector.broadcast %cst_5 : f32 to vector<2x128xf32>
    %7 = arith.maximumf %5, %6 : vector<2x128xf32>
    %8 = arith.truncf %7 : vector<2x128xf32> to vector<2x128xbf16>
    %c0_6 = arith.constant 0 : index
    %c0_7 = arith.constant 0 : index
    %9 = vector.load %arg3[%c0_6, %c0_7] : memref<128x128xbf16, #tpu.memory_space<vmem>>, vector<128x128xbf16>
    %cst_8 = arith.constant dense<0.000000e+00> : vector<2x128xf32>
    %10 = tpu.matmul %8, %9, %cst_8 {dimension_numbers = #tpu.dot_dimension_numbers<[1], [0], [0], [1], [0, 0, 1, 1], [], []>} : vector<2x128xbf16>, vector<128x128xbf16>, vector<2x128xf32> -> vector<2x128xf32>
    %c0_9 = arith.constant 0 : index
    %c0_10 = arith.constant 0 : index
    %11 = vector.load %arg4[%c0_9, %c0_10] : memref<1x128xf32, #tpu.memory_space<vmem>>, vector<1x128xf32>
    %12 = vector.broadcast %11 : vector<1x128xf32> to vector<2x128xf32>
    %13 = arith.addf %10, %12 : vector<2x128xf32>
    %c0_11 = arith.constant 0 : index
    %c0_12 = arith.constant 0 : index
    %14 = vector.load %arg5[%c0_11, %c0_12] : memref<2x128xf32, #tpu.memory_space<vmem>>, vector<2x128xf32>
    tpu.vector_store %arg5[%c0_11, %c0_12], %13 {strides = array<i32>} : memref<2x128xf32, #tpu.memory_space<vmem>>, vector<2x128xf32>,
    return
  }
}

</mosaic_0001>

<bundles_post_ra>
// kernel: _forward.3
= control target key start
LH: loop header
LB: loop body
LE: loop exit
PB: predicated region body
PF: predicated region fallthrough
CT: control target
= control target key end

     0   :  { %s1412_s12 = smov 0   ;;  %s1617_s0 = inlined_call_operand.vmem [shape: bf16[672,75], index: 0, kind: input, shape index: {}]   ;;  %s1618_s1 = inlined_call_operand.vmem [shape: bf16[75,128], index: 1, kind: input, shape index: {}]   ;;  %s1619_s2 = inlined_call_operand.vmem [shape: f32[1,128], index: 2, kind: input, shape index: {}]   ;;  %s1620_s3 = inlined_call_operand.vmem [shape: bf16[672,128], index: 3, kind: output, shape index: {}]  }
   0x1 LB: > { %s948_s13 = sadd.s32 4294967295, %s1387_s12   ;;  %p952_p0 = scmp.ge.s32.totalorder %s1387_s12, 1  ;;  %s1387_s12 = sphi %s1412_s12, %s13_s12  }
   0x2   : > { %p138_p1 = scmp.lt.s32.totalorder %s1387_s12, 3 }
   0x4   : > { %p139_p2 = pnand %p952_p0, %p138_p1 }
   0x5   : > { %v1355_v0 = vld [vmem:[%s1618_s1] sm:$0xff] (!%p139_p2)   ;;  %v1389_v1 = vmov (!%p139_p2), 0.0   ;;  %v1356_v2 = vld [vmem:[%s1618_s1 + $0x8] sm:$0xff] (!%p139_p2)   ;;  %vm432_vm0 = vcmask (!%p139_p2), 1044480   ;;  %s162_s18 = smul.u32 (!%p139_p2), 42, %s948_s13  ;;  %v1357_v3 = vld [vmem:[%s1618_s1 + $0x10] sm:$0xff] (!%p139_p2)  }
   0x6   : > { %142 = sbr.rel (%p139_p2) target bundleno = 327 (0x147), region = 32  ;;  %1240 = vmatprep.subr.bf16.mxu0 (!%p139_p2), %v1389_v1  ;;  %1334 = vmatprep.subr.bf16.mxu1 (!%p139_p2), %v1389_v1  ;;  %vm433_vm1 = vcmask (!%p139_p2), 1045504   ;;  %v1390_v4 = vmov (!%p139_p2), 65535   ;;  %vm1391_vm2 = vmmov (!%p139_p2), 0   ;;  %v1358_v6 = vld [vmem:[%s1618_s1 + $0x18] sm:$0xff] (!%p139_p2)   ;;  %vm368_vm3 = vcmask (!%p139_p2), 613376  }
   0x7   : > { %1241 = vmatpush3.bf16.msra.mxu0 (!%p139_p2), %v1355_v0  ;;  %1339 = vmatpush3.bf16.msra.mxu1 (!%p139_p2), %v1355_v0  ;;  %p163_p3 = scmp.lt.s32.totalorder (!%p139_p2), %s162_s18, 83  ;;  %v434_v5 = vsel (!%p139_p2), %vm432_vm0, 4294967295, %v1390_v4  ;;  %v1359_v7 = vld [vmem:[%s1618_s1 + $0x20] sm:$0x3f] (!%p139_p2)  }
   0x8   : > { %1242 = vmatprep.subr.bf16.mxu0 (!%p139_p2), %v1389_v1  ;;  %1335 = vmatprep.subr.bf16.mxu1 (!%p139_p2), %v1389_v1  ;;  %v435_v8 = vsel (!%p139_p2), %vm433_vm1, %v434_v5, 0  ;;  %v1542_v31 = vld [vmem:[%s1619_s2] ss:$0 sm:$0xff] (!%p139_p2) }
   0x9   : > { %1250 = vmatprep.mubr.msk.bf16.mxu0 (!%p139_p2), %vm1391_vm2, %v1389_v1  ;;  %1294 = vmatprep.mubr.msk.bf16.mxu1 (!%p139_p2), %vm1391_vm2, %v1389_v1  ;;  %v437_v9 = vand.u32 (!%p139_p2), %v1359_v7, %v435_v8 }
   0xb   : > { %1243 = vmatpush3.bf16.msra.mxu0 (!%p139_p2), %v1356_v2  ;;  %1340 = vmatpush3.bf16.msra.mxu1 (!%p139_p2), %v1356_v2 }
   0xc   : > { %1244 = vmatprep.subr.bf16.mxu0 (!%p139_p2), %v1389_v1  ;;  %1336 = vmatprep.subr.bf16.mxu1 (!%p139_p2), %v1389_v1 }
   0xd   : > { %s1622_s18 = smov (!%p163_p3, %s162_s18), 83 }
   0xe   : > { %s953_s25 = sshll.u32 %s1622_s18, 2 }
   0xf   : > { %1245 = vmatpush3.bf16.msra.mxu0 %v1357_v3  ;;  %1341 = vmatpush3.bf16.msra.mxu1 %v1357_v3  ;;  %s1455_s28 = scalar_lea.vmem %s1617_s0, %s953_s25  ;;  %s1553_s6 = scalar_lea.vmem %s1620_s3, %s953_s25 }
  0x10   : > { %1246 = vmatprep.subr.bf16.mxu0 %v1389_v1  ;;  %1337 = vmatprep.subr.bf16.mxu1 %v1389_v1  ;;  %v1360_v10 = vld [vmem:[%s1455_s28] sm:$0xff]   ;;  %v1361_v11 = vld [vmem:[%s1455_s28 + $0x58] sm:$0xff]   ;;  %v1362_v12 = vld [vmem:[%s1455_s28 + $0x8] sm:$0xff]  }
  0x11   : > { %v1363_v13 = vld [vmem:[%s1455_s28 + $0x60] sm:$0xff]   ;;  %v1364_v14 = vld [vmem:[%s1455_s28 + $0x10] sm:$0xff]   ;;  %v1365_v15 = vld [vmem:[%s1455_s28 + $0x68] sm:$0xff]  }
  0x12   : > { %v1366_v16 = vld [vmem:[%s1455_s28 + $0x18] sm:$0xff]   ;;  %v1367_v17 = vld [vmem:[%s1455_s28 + $0x70] sm:$0xff]   ;;  %v1368_v18 = vld [vmem:[%s1455_s28 + $0x20] sm:$0xff]  }
  0x13   : > { %1247 = vmatpush3.bf16.msra.mxu0 %v1358_v6  ;;  %1342 = vmatpush3.bf16.msra.mxu1 %v1358_v6  ;;  %v1369_v19 = vld [vmem:[%s1455_s28 + $0x78] sm:$0xff]   ;;  %v1370_v20 = vld [vmem:[%s1455_s28 + $0x28] sm:$0xff]   ;;  %v1371_v21 = vld [vmem:[%s1455_s28 + $0x80] sm:$0xff]  }
  0x14   : > { %1248 = vmatprep.subr.bf16.mxu0 %v1389_v1  ;;  %1338 = vmatprep.subr.bf16.mxu1 %v1389_v1  ;;  %v1372_v22 = vld [vmem:[%s1455_s28 + $0x30] sm:$0xff]   ;;  %v1373_v23 = vld [vmem:[%s1455_s28 + $0x88] sm:$0xff]   ;;  %v1374_v24 = vld [vmem:[%s1455_s28 + $0x38] sm:$0xff]  }
  0x15   : > { %v1375_v25 = vld [vmem:[%s1455_s28 + $0x90] sm:$0xff]   ;;  %v1376_v26 = vld [vmem:[%s1455_s28 + $0x40] sm:$0xff]   ;;  %v1377_v27 = vld [vmem:[%s1455_s28 + $0x98] sm:$0xff]  }
  0x16   : > { %v1378_v28 = vld [vmem:[%s1455_s28 + $0x48] sm:$0xff]   ;;  %v1379_v29 = vld [vmem:[%s1455_s28 + $0xa0] sm:$0xff]   ;;  %v1380_v30 = vld [vmem:[%s1455_s28 + $0x50] sm:$0xff]  }
  0x17   : > { %1249 = vmatpush3.bf16.msra.mxu0 %v437_v9  ;;  %1343 = vmatpush3.bf16.msra.mxu1 %v437_v9 }
  0x1a   : > { %1251 = vmatmul.mubr.msk.bf16.vlgmr.msra.gmra.mrb[0].mxu0 %vm368_vm3, %v1360_v10  ;;  %1295 = vmatmul.mubr.msk.bf16.vlgmr.msra.gmra.mrb[0].mxu1 %vm368_vm3, %v1361_v11 }
  0x1b   : > { %1254 = vmatprep.mubr.msk.bf16.mxu0 %vm1391_vm2, %v1389_v1  ;;  %1298 = vmatprep.mubr.msk.bf16.mxu1 %vm1391_vm2, %v1389_v1 }
  0x22   : > { %1255 = vmatmul.mubr.msk.bf16.gmra.mrb[4].mxu0 %vm368_vm3, %v1362_v12  ;;  %1299 = vmatmul.mubr.msk.bf16.gmra.mrb[4].mxu1 %vm368_vm3, %v1363_v13 }
  0x23   : > { %1258 = vmatprep.mubr.msk.bf16.mxu0 %vm1391_vm2, %v1389_v1  ;;  %1302 = vmatprep.mubr.msk.bf16.mxu1 %vm1391_vm2, %v1389_v1 }
  0x2a   : > { %1259 = vmatmul.mubr.msk.bf16.gmra.mrb[8].mxu0 %vm368_vm3, %v1364_v14  ;;  %1303 = vmatmul.mubr.msk.bf16.gmra.mrb[8].mxu1 %vm368_vm3, %v1365_v15 }
  0x2b   : > { %1262 = vmatprep.mubr.msk.bf16.mxu0 %vm1391_vm2, %v1389_v1  ;;  %1306 = vmatprep.mubr.msk.bf16.mxu1 %vm1391_vm2, %v1389_v1 }
  0x32   : > { %1263 = vmatmul.mubr.msk.bf16.gmra.mrb[12].mxu0 %vm368_vm3, %v1366_v16  ;;  %1307 = vmatmul.mubr.msk.bf16.gmra.mrb[12].mxu1 %vm368_vm3, %v1367_v17 }
  0x33   : > { %1266 = vmatprep.mubr.msk.bf16.mxu0 %vm1391_vm2, %v1389_v1  ;;  %1310 = vmatprep.mubr.msk.bf16.mxu1 %vm1391_vm2, %v1389_v1 }
  0x3a   : > { %1267 = vmatmul.mubr.msk.bf16.gmra.mrb[16].mxu0 %vm368_vm3, %v1368_v18  ;;  %1311 = vmatmul.mubr.msk.bf16.gmra.mrb[16].mxu1 %vm368_vm3, %v1369_v19 }
  0x3b   : > { %1270 = vmatprep.mubr.msk.bf16.mxu0 %vm1391_vm2, %v1389_v1  ;;  %1314 = vmatprep.mubr.msk.bf16.mxu1 %vm1391_vm2, %v1389_v1 }
  0x42   : > { %1271 = vmatmul.mubr.msk.bf16.gmra.mrb[20].mxu0 %vm368_vm3, %v1370_v20  ;;  %1315 = vmatmul.mubr.msk.bf16.gmra.mrb[20].mxu1 %vm368_vm3, %v1371_v21 }
  0x43   : > { %1274 = vmatprep.mubr.msk.bf16.mxu0 %vm1391_vm2, %v1389_v1  ;;  %1318 = vmatprep.mubr.msk.bf16.mxu1 %vm1391_vm2, %v1389_v1 }
  0x4a   : > { %1275 = vmatmul.mubr.msk.bf16.gmra.mrb[24].mxu0 %vm368_vm3, %v1372_v22  ;;  %1319 = vmatmul.mubr.msk.bf16.gmra.mrb[24].mxu1 %vm368_vm3, %v1373_v23 }
  0x4b   : > { %1278 = vmatprep.mubr.msk.bf16.mxu0 %vm1391_vm2, %v1389_v1  ;;  %1322 = vmatprep.mubr.msk.bf16.mxu1 %vm1391_vm2, %v1389_v1 }
  0x52   : > { %1279 = vmatmul.mubr.msk.bf16.gmra.mrb[28].mxu0 %vm368_vm3, %v1374_v24  ;;  %1323 = vmatmul.mubr.msk.bf16.gmra.mrb[28].mxu1 %vm368_vm3, %v1375_v25 }
  0x53   : > { %1282 = vmatprep.mubr.msk.bf16.mxu0 %vm1391_vm2, %v1389_v1  ;;  %1326 = vmatprep.mubr.msk.bf16.mxu1 %vm1391_vm2, %v1389_v1 }
  0x5a   : > { %1283 = vmatmul.mubr.msk.bf16.gmra.mrb[32].mxu0 %vm368_vm3, %v1376_v26  ;;  %1327 = vmatmul.mubr.msk.bf16.gmra.mrb[32].mxu1 %vm368_vm3, %v1377_v27 }
  0x5b   : > { %1286 = vmatprep.mubr.msk.bf16.mxu0 %vm1391_vm2, %v1389_v1  ;;  %1330 = vmatprep.mubr.msk.bf16.mxu1 %vm1391_vm2, %v1389_v1 }
  0x62   : > { %1287 = vmatmul.mubr.msk.bf16.gmra.mrb[36].mxu0 %vm368_vm3, %v1378_v28  ;;  %1331 = vmatmul.mubr.msk.bf16.gmra.mrb[36].mxu1 %vm368_vm3, %v1379_v29 }
  0x63   : > { %1290 = vmatprep.mubr.msk.bf16.mxu0 %vm1391_vm2, %v1389_v1 }
  0x6a   : > { %1291 = vmatmul.mubr.msk.bf16.gmra.mrb[40].mxu0 %vm368_vm3, %v1380_v30 }
  0xed   : > { %v473_v32 = vpop.f32.mrb[0].mxu0  ;;  %v561_v33 = vpop.f32.mrb[0].mxu1 }
  0xee   : > { %v474_v34 = vadd.f32 %v1542_v31, %v473_v32  ;;  %v1252_v35 = vpop.f32.mrb[1].mxu0  ;;  %v562_v36 = vadd.f32 %v1542_v31, %v561_v33  ;;  %v1296_v37 = vpop.f32.mrb[1].mxu1 }
  0xef   : > { %v476_v38 = vpop.f32.mrb[2].mxu0  ;;  %v564_v39 = vpop.f32.mrb[2].mxu1 }
  0xf0   : > { %v477_v40 = vadd.f32 %v1542_v31, %v476_v38  ;;  %v1253_v41 = vpop.f32.mrb[3].mxu0  ;;  %v662_v42 = vmax.f32 %v562_v36, 0.0  ;;  %v565_v43 = vadd.f32 %v1542_v31, %v564_v39  ;;  %v1297_v44 = vpop.f32.mrb[3].mxu1  ;;  %v640_v45 = vmax.f32 %v474_v34, 0.0 }
  0xf2   : > { %v641_v46 = vmax.f32 %v477_v40, 0.0  ;;  %v663_v47 = vmax.f32 %v565_v43, 0.0 }
  0xf4   : > { %v1092_v48 = vpack.c.bf16 %v641_v46, %v640_v45  ;;  %v1147_v49 = vpack.c.bf16 %v663_v47, %v662_v42 }
  0xf5   : > { %v481_v50 = vpop.f32.mrb[4].mxu0  ;;  %v569_v51 = vpop.f32.mrb[4].mxu1 }
  0xf6   : > { %1093 = vst [vmem:[%s1553_s6] sm:$0xff] %v1092_v48   ;;  %1204 = vst [vmem:[%s1553_s6 + $0x58] sm:$0xff] %v1147_v49   ;;  %v482_v52 = vadd.f32 %v1542_v31, %v481_v50  ;;  %v1256_v53 = vpop.f32.mrb[5].mxu0  ;;  %v570_v54 = vadd.f32 %v1542_v31, %v569_v51  ;;  %v1300_v55 = vpop.f32.mrb[5].mxu1 }
  0xf7   : > { %v484_v56 = vpop.f32.mrb[6].mxu0  ;;  %v572_v57 = vpop.f32.mrb[6].mxu1 }
  0xf8   : > { %v485_v58 = vadd.f32 %v1542_v31, %v484_v56  ;;  %v1257_v59 = vpop.f32.mrb[7].mxu0  ;;  %v664_v60 = vmax.f32 %v570_v54, 0.0  ;;  %v573_v61 = vadd.f32 %v1542_v31, %v572_v57  ;;  %v1301_v62 = vpop.f32.mrb[7].mxu1  ;;  %v642_v63 = vmax.f32 %v482_v52, 0.0 }
  0xfa   : > { %v643_v0 = vmax.f32 %v485_v58, 0.0  ;;  %v665_v1 = vmax.f32 %v573_v61, 0.0 }
  0xfc   : > { %v1097_v2 = vpack.c.bf16 %v643_v0, %v642_v63  ;;  %v1152_v3 = vpack.c.bf16 %v665_v1, %v664_v60 }
  0xfd   : > { %v489_v4 = vpop.f32.mrb[8].mxu0  ;;  %v577_v5 = vpop.f32.mrb[8].mxu1 }
  0xfe   : > { %1194 = vst [vmem:[%s1553_s6 + $0x8] sm:$0xff] %v1097_v2   ;;  %1205 = vst [vmem:[%s1553_s6 + $0x60] sm:$0xff] %v1152_v3   ;;  %v490_v6 = vadd.f32 %v1542_v31, %v489_v4  ;;  %v1260_v7 = vpop.f32.mrb[9].mxu0  ;;  %v578_v8 = vadd.f32 %v1542_v31, %v577_v5  ;;  %v1304_v9 = vpop.f32.mrb[9].mxu1 }
  0xff   : > { %v492_v10 = vpop.f32.mrb[10].mxu0  ;;  %v580_v11 = vpop.f32.mrb[10].mxu1 }
 0x100   : > { %v493_v12 = vadd.f32 %v1542_v31, %v492_v10  ;;  %v1261_v13 = vpop.f32.mrb[11].mxu0  ;;  %v666_v14 = vmax.f32 %v578_v8, 0.0  ;;  %v581_v15 = vadd.f32 %v1542_v31, %v580_v11  ;;  %v1305_v16 = vpop.f32.mrb[11].mxu1  ;;  %v644_v17 = vmax.f32 %v490_v6, 0.0 }
 0x102   : > { %v645_v18 = vmax.f32 %v493_v12, 0.0  ;;  %v667_v19 = vmax.f32 %v581_v15, 0.0 }
 0x104   : > { %v1102_v20 = vpack.c.bf16 %v645_v18, %v644_v17  ;;  %v1157_v21 = vpack.c.bf16 %v667_v19, %v666_v14 }
 0x105   : > { %v497_v22 = vpop.f32.mrb[12].mxu0  ;;  %v585_v23 = vpop.f32.mrb[12].mxu1 }
 0x106   : > { %1195 = vst [vmem:[%s1553_s6 + $0x10] sm:$0xff] %v1102_v20   ;;  %1206 = vst [vmem:[%s1553_s6 + $0x68] sm:$0xff] %v1157_v21   ;;  %v498_v24 = vadd.f32 %v1542_v31, %v497_v22  ;;  %v1264_v25 = vpop.f32.mrb[13].mxu0  ;;  %v586_v26 = vadd.f32 %v1542_v31, %v585_v23  ;;  %v1308_v27 = vpop.f32.mrb[13].mxu1 }
 0x107   : > { %v500_v28 = vpop.f32.mrb[14].mxu0  ;;  %v588_v29 = vpop.f32.mrb[14].mxu1 }
 0x108   : > { %v501_v30 = vadd.f32 %v1542_v31, %v500_v28  ;;  %v1265_v32 = vpop.f32.mrb[15].mxu0  ;;  %v668_v33 = vmax.f32 %v586_v26, 0.0  ;;  %v589_v34 = vadd.f32 %v1542_v31, %v588_v29  ;;  %v1309_v35 = vpop.f32.mrb[15].mxu1  ;;  %v646_v36 = vmax.f32 %v498_v24, 0.0 }
 0x10a   : > { %v647_v37 = vmax.f32 %v501_v30, 0.0  ;;  %v669_v38 = vmax.f32 %v589_v34, 0.0 }
 0x10c   : > { %v1107_v39 = vpack.c.bf16 %v647_v37, %v646_v36  ;;  %v1162_v40 = vpack.c.bf16 %v669_v38, %v668_v33 }
 0x10d   : > { %v505_v41 = vpop.f32.mrb[16].mxu0  ;;  %v593_v42 = vpop.f32.mrb[16].mxu1 }
 0x10e   : > { %1196 = vst [vmem:[%s1553_s6 + $0x18] sm:$0xff] %v1107_v39   ;;  %1207 = vst [vmem:[%s1553_s6 + $0x70] sm:$0xff] %v1162_v40   ;;  %v506_v43 = vadd.f32 %v1542_v31, %v505_v41  ;;  %v1268_v44 = vpop.f32.mrb[17].mxu0  ;;  %v594_v45 = vadd.f32 %v1542_v31, %v593_v42  ;;  %v1312_v46 = vpop.f32.mrb[17].mxu1 }
 0x10f   : > { %v508_v47 = vpop.f32.mrb[18].mxu0  ;;  %v596_v48 = vpop.f32.mrb[18].mxu1 }
 0x110   : > { %v509_v49 = vadd.f32 %v1542_v31, %v508_v47  ;;  %v1269_v50 = vpop.f32.mrb[19].mxu0  ;;  %v670_v51 = vmax.f32 %v594_v45, 0.0  ;;  %v597_v52 = vadd.f32 %v1542_v31, %v596_v48  ;;  %v1313_v53 = vpop.f32.mrb[19].mxu1  ;;  %v648_v54 = vmax.f32 %v506_v43, 0.0 }
 0x112   : > { %v649_v55 = vmax.f32 %v509_v49, 0.0  ;;  %v671_v56 = vmax.f32 %v597_v52, 0.0 }
 0x114   : > { %v1112_v57 = vpack.c.bf16 %v649_v55, %v648_v54  ;;  %v1167_v58 = vpack.c.bf16 %v671_v56, %v670_v51 }
 0x115   : > { %v513_v59 = vpop.f32.mrb[20].mxu0  ;;  %v601_v60 = vpop.f32.mrb[20].mxu1 }
 0x116   : > { %1197 = vst [vmem:[%s1553_s6 + $0x20] sm:$0xff] %v1112_v57   ;;  %1208 = vst [vmem:[%s1553_s6 + $0x78] sm:$0xff] %v1167_v58   ;;  %v514_v61 = vadd.f32 %v1542_v31, %v513_v59  ;;  %v1272_v62 = vpop.f32.mrb[21].mxu0  ;;  %v602_v63 = vadd.f32 %v1542_v31, %v601_v60  ;;  %v1316_v0 = vpop.f32.mrb[21].mxu1 }
 0x117   : > { %v516_v1 = vpop.f32.mrb[22].mxu0  ;;  %v604_v2 = vpop.f32.mrb[22].mxu1 }
 0x118   : > { %v517_v3 = vadd.f32 %v1542_v31, %v516_v1  ;;  %v1273_v4 = vpop.f32.mrb[23].mxu0  ;;  %v672_v5 = vmax.f32 %v602_v63, 0.0  ;;  %v605_v6 = vadd.f32 %v1542_v31, %v604_v2  ;;  %v1317_v7 = vpop.f32.mrb[23].mxu1  ;;  %v650_v8 = vmax.f32 %v514_v61, 0.0 }
 0x11a   : > { %v651_v9 = vmax.f32 %v517_v3, 0.0  ;;  %v673_v10 = vmax.f32 %v605_v6, 0.0 }
 0x11c   : > { %v1117_v11 = vpack.c.bf16 %v651_v9, %v650_v8  ;;  %v1172_v12 = vpack.c.bf16 %v673_v10, %v672_v5 }
 0x11d   : > { %v521_v13 = vpop.f32.mrb[24].mxu0  ;;  %v609_v14 = vpop.f32.mrb[24].mxu1 }
 0x11e   : > { %1198 = vst [vmem:[%s1553_s6 + $0x28] sm:$0xff] %v1117_v11   ;;  %1209 = vst [vmem:[%s1553_s6 + $0x80] sm:$0xff] %v1172_v12   ;;  %v522_v15 = vadd.f32 %v1542_v31, %v521_v13  ;;  %v1276_v16 = vpop.f32.mrb[25].mxu0  ;;  %v610_v17 = vadd.f32 %v1542_v31, %v609_v14  ;;  %v1320_v18 = vpop.f32.mrb[25].mxu1 }
 0x11f   : > { %v524_v19 = vpop.f32.mrb[26].mxu0  ;;  %v612_v20 = vpop.f32.mrb[26].mxu1 }
 0x120   : > { %v525_v21 = vadd.f32 %v1542_v31, %v524_v19  ;;  %v1277_v22 = vpop.f32.mrb[27].mxu0  ;;  %v674_v23 = vmax.f32 %v610_v17, 0.0  ;;  %v613_v24 = vadd.f32 %v1542_v31, %v612_v20  ;;  %v1321_v25 = vpop.f32.mrb[27].mxu1  ;;  %v652_v26 = vmax.f32 %v522_v15, 0.0 }
 0x122   : > { %v653_v27 = vmax.f32 %v525_v21, 0.0  ;;  %v675_v28 = vmax.f32 %v613_v24, 0.0 }
 0x124   : > { %v1122_v29 = vpack.c.bf16 %v653_v27, %v652_v26  ;;  %v1177_v30 = vpack.c.bf16 %v675_v28, %v674_v23 }
 0x125   : > { %v529_v32 = vpop.f32.mrb[28].mxu0  ;;  %v617_v33 = vpop.f32.mrb[28].mxu1 }
 0x126   : > { %1199 = vst [vmem:[%s1553_s6 + $0x30] sm:$0xff] %v1122_v29   ;;  %1210 = vst [vmem:[%s1553_s6 + $0x88] sm:$0xff] %v1177_v30   ;;  %v530_v34 = vadd.f32 %v1542_v31, %v529_v32  ;;  %v1280_v35 = vpop.f32.mrb[29].mxu0  ;;  %v618_v36 = vadd.f32 %v1542_v31, %v617_v33  ;;  %v1324_v37 = vpop.f32.mrb[29].mxu1 }
 0x127   : > { %v532_v38 = vpop.f32.mrb[30].mxu0  ;;  %v620_v39 = vpop.f32.mrb[30].mxu1 }
 0x128   : > { %v533_v40 = vadd.f32 %v1542_v31, %v532_v38  ;;  %v1281_v41 = vpop.f32.mrb[31].mxu0  ;;  %v676_v42 = vmax.f32 %v618_v36, 0.0  ;;  %v621_v43 = vadd.f32 %v1542_v31, %v620_v39  ;;  %v1325_v44 = vpop.f32.mrb[31].mxu1  ;;  %v654_v45 = vmax.f32 %v530_v34, 0.0 }
 0x12a   : > { %v655_v46 = vmax.f32 %v533_v40, 0.0  ;;  %v677_v47 = vmax.f32 %v621_v43, 0.0 }
 0x12c   : > { %v1127_v48 = vpack.c.bf16 %v655_v46, %v654_v45  ;;  %v1182_v49 = vpack.c.bf16 %v677_v47, %v676_v42 }
 0x12d   : > { %v537_v50 = vpop.f32.mrb[32].mxu0  ;;  %v625_v51 = vpop.f32.mrb[32].mxu1 }
 0x12e   : > { %1200 = vst [vmem:[%s1553_s6 + $0x38] sm:$0xff] %v1127_v48   ;;  %1211 = vst [vmem:[%s1553_s6 + $0x90] sm:$0xff] %v1182_v49   ;;  %v538_v52 = vadd.f32 %v1542_v31, %v537_v50  ;;  %v1284_v53 = vpop.f32.mrb[33].mxu0  ;;  %v626_v54 = vadd.f32 %v1542_v31, %v625_v51  ;;  %v1328_v55 = vpop.f32.mrb[33].mxu1 }
 0x12f   : > { %v540_v56 = vpop.f32.mrb[34].mxu0  ;;  %v628_v57 = vpop.f32.mrb[34].mxu1 }
 0x130   : > { %v541_v58 = vadd.f32 %v1542_v31, %v540_v56  ;;  %v1285_v59 = vpop.f32.mrb[35].mxu0  ;;  %v678_v60 = vmax.f32 %v626_v54, 0.0  ;;  %v629_v61 = vadd.f32 %v1542_v31, %v628_v57  ;;  %v1329_v62 = vpop.f32.mrb[35].mxu1  ;;  %v656_v63 = vmax.f32 %v538_v52, 0.0 }
 0x132   : > { %v657_v0 = vmax.f32 %v541_v58, 0.0  ;;  %v679_v1 = vmax.f32 %v629_v61, 0.0 }
 0x134   : > { %v1132_v2 = vpack.c.bf16 %v657_v0, %v656_v63  ;;  %v1187_v3 = vpack.c.bf16 %v679_v1, %v678_v60 }
 0x135   : > { %v545_v4 = vpop.f32.mrb[36].mxu0  ;;  %v633_v5 = vpop.f32.mrb[36].mxu1 }
 0x136   : > { %1201 = vst [vmem:[%s1553_s6 + $0x40] sm:$0xff] %v1132_v2   ;;  %1212 = vst [vmem:[%s1553_s6 + $0x98] sm:$0xff] %v1187_v3   ;;  %v546_v6 = vadd.f32 %v1542_v31, %v545_v4  ;;  %v1288_v7 = vpop.f32.mrb[37].mxu0  ;;  %v634_v8 = vadd.f32 %v1542_v31, %v633_v5  ;;  %v1332_v9 = vpop.f32.mrb[37].mxu1 }
 0x137   : > { %v548_v10 = vpop.f32.mrb[38].mxu0  ;;  %v636_v11 = vpop.f32.mrb[38].mxu1 }
 0x138   : > { %v549_v12 = vadd.f32 %v1542_v31, %v548_v10  ;;  %v1289_v13 = vpop.f32.mrb[39].mxu0  ;;  %v680_v14 = vmax.f32 %v634_v8, 0.0  ;;  %v637_v15 = vadd.f32 %v1542_v31, %v636_v11  ;;  %v1333_v16 = vpop.f32.mrb[39].mxu1  ;;  %v658_v17 = vmax.f32 %v546_v6, 0.0 }
 0x13a   : > { %v659_v18 = vmax.f32 %v549_v12, 0.0  ;;  %v681_v19 = vmax.f32 %v637_v15, 0.0 }
 0x13c   : > { %v1137_v20 = vpack.c.bf16 %v659_v18, %v658_v17  ;;  %v1192_v21 = vpack.c.bf16 %v681_v19, %v680_v14 }
 0x13d   : > { %v553_v22 = vpop.f32.mrb[40].mxu0 }
 0x13e   : > { %1202 = vst [vmem:[%s1553_s6 + $0x48] sm:$0xff] %v1137_v20   ;;  %1213 = vst [vmem:[%s1553_s6 + $0xa0] sm:$0xff] %v1192_v21   ;;  %v554_v23 = vadd.f32 %v1542_v31, %v553_v22  ;;  %v1292_v24 = vpop.f32.mrb[41].mxu0 }
 0x13f   : > { %v556_v25 = vpop.f32.mrb[42].mxu0 }
 0x140   : > { %v557_v26 = vadd.f32 %v1542_v31, %v556_v25  ;;  %v1293_v27 = vpop.f32.mrb[43].mxu0  ;;  %v660_v28 = vmax.f32 %v554_v23, 0.0 }
 0x142   : > { %v661_v29 = vmax.f32 %v557_v26, 0.0 }
 0x144   : > { %v1142_v30 = vpack.c.bf16 %v661_v29, %v660_v28 }
 0x146   : > { %1203 = vst [vmem:[%s1553_s6 + $0x50] sm:$0xff] %v1142_v30  }
 0x147 PF: > { %s13_s12 = sadd.s32 1, %s1387_s12  }
 0x148   : > { %p10_p4 = scmp.ge.s32.totalorder %s13_s12, 4  }
 0x14a   :  { %12 = sbr.rel (!%p10_p4) target bundleno = 1 (0x1), region = 62 }

// kernel: _forward.4
= control target key start
LH: loop header
LB: loop body
LE: loop exit
PB: predicated region body
PF: predicated region fallthrough
CT: control target
= control target key end

     0   :  { %v902_v0 = vmov 0   ;;  %vm375_vm0 = vcmask 130048   ;;  %s1131_s1 = inlined_call_operand.vmem [shape: bf16[400,128], index: 1, kind: input, shape index: {}]   ;;  %s1132_s0 = inlined_call_operand.vmem [shape: bf16[98,400], index: 0, kind: input, shape index: {}]   ;;  %s1133_s2 = inlined_call_operand.vmem [shape: f32[1,128], index: 2, kind: input, shape index: {}]   ;;  %s1134_s3 = inlined_call_operand.vmem [shape: bf16[98,128], index: 3, kind: output, shape index: {}]  }
   0x1   :  { %485 = vmatprep.subr.bf16.mxu1 %v902_v0  ;;  %v837_v1 = vld [vmem:[%s1131_s1 + $0x40] sm:$0xff]   ;;  %v840_v4 = vld [vmem:[%s1131_s1 + $0x48] sm:$0xff]   ;;  %v843_v7 = vld [vmem:[%s1131_s1 + $0x50] sm:$0xff]  }
   0x2   :  { %v838_v2 = vld [vmem:[%s1131_s1 + $0x80] sm:$0xff]   ;;  %778 = vmatprep.subr.bf16.mxu0 %v837_v1  ;;  %v841_v5 = vld [vmem:[%s1131_s1 + $0x88] sm:$0xff]   ;;  %v844_v8 = vld [vmem:[%s1131_s1 + $0x90] sm:$0xff]  }
   0x3   :  { %v839_v3 = vld [vmem:[%s1131_s1] sm:$0xff]   ;;  %486 = vmatpush1.bf16.msra.mxu1 %v838_v2  ;;  %v842_v6 = vld [vmem:[%s1131_s1 + $0x8] sm:$0xff]   ;;  %v845_v9 = vld [vmem:[%s1131_s1 + $0x10] sm:$0xff]  }
   0x4   :  { %779 = vmatpush3.bf16.msra.mxu0 %v839_v3  ;;  %487 = vmatprep.subr.bf16.mxu1 %v902_v0  ;;  %v846_v10 = vld [vmem:[%s1131_s1 + $0x58] sm:$0xff]   ;;  %v849_v13 = vld [vmem:[%s1131_s1 + $0x60] sm:$0xff]   ;;  %v852_v16 = vld [vmem:[%s1131_s1 + $0x68] sm:$0xff]  }
   0x5   :  { %780 = vmatprep.subr.bf16.mxu0 %v840_v4  ;;  %v847_v11 = vld [vmem:[%s1131_s1 + $0x98] sm:$0xff]   ;;  %v850_v14 = vld [vmem:[%s1131_s1 + $0xa0] sm:$0xff]   ;;  %v853_v17 = vld [vmem:[%s1131_s1 + $0xa8] sm:$0xff]  }
   0x6   :  { %v848_v12 = vld [vmem:[%s1131_s1 + $0x18] sm:$0xff]   ;;  %v851_v15 = vld [vmem:[%s1131_s1 + $0x20] sm:$0xff]   ;;  %v854_v18 = vld [vmem:[%s1131_s1 + $0x28] sm:$0xff]  }
   0x7   :  { %488 = vmatpush1.bf16.msra.mxu1 %v841_v5  ;;  %v855_v19 = vld [vmem:[%s1131_s1 + $0x70] sm:$0xff]   ;;  %v858_v22 = vld [vmem:[%s1131_s1 + $0x78] sm:$0xff]   ;;  %v864_v28 = vld [vmem:[%s1131_s1 + $0xc0] sm:$0xff]  }
   0x8   :  { %781 = vmatpush3.bf16.msra.mxu0 %v842_v6  ;;  %489 = vmatprep.subr.bf16.mxu1 %v902_v0  ;;  %v856_v20 = vld [vmem:[%s1131_s1 + $0xb0] sm:$0xff]   ;;  %v859_v24 = vld [vmem:[%s1131_s1 + $0xb8] sm:$0xff]   ;;  %v39_v48 = vld [vmem:[%s1132_s0 + $0xc0] sm:$0x11] }
   0x9   :  { %782 = vmatprep.subr.bf16.mxu0 %v843_v7  ;;  %v857_v21 = vld [vmem:[%s1131_s1 + $0x30] sm:$0xff]   ;;  %v867_v25 = vld [vmem:[%s1132_s0 + $0xc] ss:$16 sps:$4 sm:$0xff]   ;;  %v865_v30 = vld [vmem:[%s1132_s0 + $0x8] ss:$16 sps:$4 sm:$0xff]   ;;  %v682_v50 = vcombine.high %v39_v48, %v39_v48  ;;  %v681_v54 = vcombine.low %v39_v48, %v39_v48 }
   0xa   :  { %v863_v23 = vld [vmem:[%s1132_s0 + $0x4] ss:$16 sps:$4 sm:$0xff]   ;;  %v860_v26 = vld [vmem:[%s1131_s1 + $0x38] sm:$0xff]   ;;  %710 = vmatprep.mubr.msk.bf16.mxu1 %vm375_vm0, %v867_v25  ;;  %v861_v27 = vld [vmem:[%s1132_s0] ss:$16 sps:$4 sm:$0xff]  }
   0xb   :  { %490 = vmatpush1.bf16.msra.mxu1 %v844_v8  ;;  %429 = vmatprep.mubr.bf16.mxu0 %v863_v23  ;;  %v868_v29 = vld [vmem:[%s1132_s0 + $0x24] ss:$16 sps:$4 sm:$0xff]   ;;  %v871_v31 = vld [vmem:[%s1132_s0 + $0x2c] ss:$16 sps:$4 sm:$0xff]   ;;  %v870_v32 = vld [vmem:[%s1132_s0 + $0x20] ss:$16 sps:$4 sm:$0xff]  }
   0xc   :  { %783 = vmatpush3.bf16.msra.mxu0 %v845_v9  ;;  %491 = vmatprep.subr.bf16.mxu1 %v902_v0  ;;  %v874_v33 = vld [vmem:[%s1132_s0 + $0x44] ss:$16 sps:$4 sm:$0xff]   ;;  %v873_v34 = vld [vmem:[%s1132_s0 + $0x28] ss:$16 sps:$4 sm:$0xff]   ;;  %v877_v35 = vld [vmem:[%s1132_s0 + $0x4c] ss:$16 sps:$4 sm:$0xff]  }
   0xd   :  { %784 = vmatprep.subr.bf16.mxu0 %v846_v10  ;;  %v876_v36 = vld [vmem:[%s1132_s0 + $0x40] ss:$16 sps:$4 sm:$0xff]   ;;  %v880_v37 = vld [vmem:[%s1132_s0 + $0x64] ss:$16 sps:$4 sm:$0xff]   ;;  %v879_v38 = vld [vmem:[%s1132_s0 + $0x48] ss:$16 sps:$4 sm:$0xff]  }
   0xe   :  { %v883_v39 = vld [vmem:[%s1132_s0 + $0x6c] ss:$16 sps:$4 sm:$0xff]   ;;  %v882_v40 = vld [vmem:[%s1132_s0 + $0x60] ss:$16 sps:$4 sm:$0xff]   ;;  %v886_v41 = vld [vmem:[%s1132_s0 + $0x84] ss:$16 sps:$4 sm:$0xff]  }
   0xf   :  { %492 = vmatpush1.bf16.msra.mxu1 %v847_v11  ;;  %v885_v42 = vld [vmem:[%s1132_s0 + $0x68] ss:$16 sps:$4 sm:$0xff]   ;;  %v889_v43 = vld [vmem:[%s1132_s0 + $0x8c] ss:$16 sps:$4 sm:$0xff]   ;;  %v888_v44 = vld [vmem:[%s1132_s0 + $0x80] ss:$16 sps:$4 sm:$0xff]  }
  0x10   :  { %785 = vmatpush3.bf16.msra.mxu0 %v848_v12  ;;  %493 = vmatprep.subr.bf16.mxu1 %v902_v0  ;;  %v892_v45 = vld [vmem:[%s1132_s0 + $0xa4] ss:$16 sps:$4 sm:$0xff]   ;;  %v891_v46 = vld [vmem:[%s1132_s0 + $0x88] ss:$16 sps:$4 sm:$0xff]   ;;  %v895_v47 = vld [vmem:[%s1132_s0 + $0xac] ss:$16 sps:$4 sm:$0xff]  }
  0x11   :  { %786 = vmatprep.subr.bf16.mxu0 %v849_v13  ;;  %v894_v49 = vld [vmem:[%s1132_s0 + $0xa0] ss:$16 sps:$4 sm:$0xff]   ;;  %v40_v51 = vld [vmem:[%s1132_s0 + $0xc8] sm:$0x11] }
  0x12   :  { %v897_v52 = vld [vmem:[%s1132_s0 + $0xa8] ss:$16 sps:$4 sm:$0xff]   ;;  %v684_v53 = vcombine.high %v40_v51, %v40_v51  ;;  %v683_v55 = vcombine.low %v40_v51, %v40_v51  ;;  %v1095_v58 = vld [vmem:[%s1133_s2] ss:$0 sm:$0xff] }
  0x13   :  { %494 = vmatpush1.bf16.msra.mxu1 %v850_v14 }
  0x14   :  { %787 = vmatpush3.bf16.msra.mxu0 %v851_v15  ;;  %495 = vmatprep.subr.bf16.mxu1 %v902_v0 }
  0x15   :  { %788 = vmatprep.subr.bf16.mxu0 %v852_v16 }
  0x17   :  { %496 = vmatpush1.bf16.msra.mxu1 %v853_v17 }
  0x18   :  { %789 = vmatpush3.bf16.msra.mxu0 %v854_v18  ;;  %497 = vmatprep.subr.bf16.mxu1 %v902_v0 }
  0x19   :  { %790 = vmatprep.subr.bf16.mxu0 %v855_v19 }
  0x1b   :  { %498 = vmatpush1.bf16.msra.mxu1 %v856_v20 }
  0x1c   :  { %791 = vmatpush3.bf16.msra.mxu0 %v857_v21  ;;  %499 = vmatprep.subr.bf16.mxu1 %v902_v0 }
  0x1d   :  { %792 = vmatprep.subr.bf16.mxu0 %v858_v22 }
  0x1f   :  { %500 = vmatpush1.bf16.msra.mxu1 %v859_v24 }
  0x20   :  { %793 = vmatpush3.bf16.msra.mxu0 %v860_v26  ;;  %501 = vmatprep.subr.bf16.mxu1 %v902_v0 }
  0x23   :  { %430 = vmatmul.mubr.bf16.vlgmr.msra.gmra.mrb[0].mxu0 %v861_v27  ;;  %502 = vmatpush1.bf16.msra.mxu1 %v864_v28 }
  0x24   :  { %437 = vmatprep.mubr.bf16.mxu0 %v868_v29 }
  0x26   :  { %518 = vmatmul.mubr.bf16.vlgmr.msra.gmra.mrb[0].mxu1 %v865_v30 }
  0x27   :  { %711 = vmatprep.mubr.msk.bf16.mxu1 %vm375_vm0, %v871_v31 }
  0x2b   :  { %438 = vmatmul.mubr.bf16.gmra.mrb[4].mxu0 %v870_v32 }
  0x2c   :  { %445 = vmatprep.mubr.bf16.mxu0 %v874_v33 }
  0x2e   :  { %526 = vmatmul.mubr.bf16.gmra.mrb[4].mxu1 %v873_v34 }
  0x2f   :  { %712 = vmatprep.mubr.msk.bf16.mxu1 %vm375_vm0, %v877_v35 }
  0x33   :  { %446 = vmatmul.mubr.bf16.gmra.mrb[8].mxu0 %v876_v36 }
  0x34   :  { %453 = vmatprep.mubr.bf16.mxu0 %v880_v37 }
  0x36   :  { %534 = vmatmul.mubr.bf16.gmra.mrb[8].mxu1 %v879_v38 }
  0x37   :  { %713 = vmatprep.mubr.msk.bf16.mxu1 %vm375_vm0, %v883_v39 }
  0x3b   :  { %454 = vmatmul.mubr.bf16.gmra.mrb[12].mxu0 %v882_v40 }
  0x3c   :  { %461 = vmatprep.mubr.bf16.mxu0 %v886_v41 }
  0x3e   :  { %542 = vmatmul.mubr.bf16.gmra.mrb[12].mxu1 %v885_v42 }
  0x3f   :  { %714 = vmatprep.mubr.msk.bf16.mxu1 %vm375_vm0, %v889_v43 }
  0x43   :  { %462 = vmatmul.mubr.bf16.gmra.mrb[16].mxu0 %v888_v44 }
  0x44   :  { %469 = vmatprep.mubr.bf16.mxu0 %v892_v45 }
  0x46   :  { %550 = vmatmul.mubr.bf16.gmra.mrb[16].mxu1 %v891_v46 }
  0x47   :  { %715 = vmatprep.mubr.msk.bf16.mxu1 %vm375_vm0, %v895_v47 }
  0x4b   :  { %470 = vmatmul.mubr.bf16.gmra.mrb[20].mxu0 %v894_v49 }
  0x4c   :  { %477 = vmatprep.mubr.bf16.mxu0 %v682_v50 }
  0x4e   :  { %558 = vmatmul.mubr.bf16.gmra.mrb[20].mxu1 %v897_v52 }
  0x4f   :  { %716 = vmatprep.mubr.msk.bf16.mxu1 %vm375_vm0, %v684_v53 }
  0x53   :  { %478 = vmatmul.mubr.bf16.gmra.mrb[24].mxu0 %v681_v54 }
  0x56   :  { %566 = vmatmul.mubr.bf16.gmra.mrb[24].mxu1 %v683_v55 }
  0xf6   :  { %v794_v56 = vpop.f32.mrb[0].mxu0 }
  0xf7   :  { %v795_v57 = vpop.f32.mrb[1].mxu0 }
  0xf8   :  { %v796_v59 = vadd.f32 %v795_v57, %v794_v56  ;;  %v797_v60 = vpop.f32.mrb[2].mxu0 }
  0xf9   :  { %v798_v61 = vpop.f32.mrb[3].mxu0  ;;  %v519_v62 = vpop.f32.mrb[0].mxu1 }
  0xfa   :  { %v799_v63 = vadd.f32 %v798_v61, %v797_v60  ;;  %v432_v0 = vadd.f32 %v796_v59, %v1095_v58  ;;  %v521_v1 = vpop.f32.mrb[1].mxu1 }
  0xfb   :  { %v522_v2 = vpop.f32.mrb[2].mxu1 }
  0xfc   :  { %v520_v3 = vadd.f32 %v519_v62, %v432_v0  ;;  %v435_v4 = vadd.f32 %v799_v63, %v1095_v58  ;;  %v524_v5 = vpop.f32.mrb[3].mxu1 }
  0xfe   :  { %v523_v6 = vadd.f32 %v522_v2, %v435_v4  ;;  %v800_v7 = vpop.f32.mrb[4].mxu0  ;;  %v573_v9 = vmax.f32 %v520_v3, 0.0 }
  0xff   :  { %v801_v8 = vpop.f32.mrb[5].mxu0 }
 0x100   :  { %v574_v10 = vmax.f32 %v523_v6, 0.0  ;;  %v802_v11 = vadd.f32 %v801_v8, %v800_v7  ;;  %v803_v12 = vpop.f32.mrb[6].mxu0 }
 0x101   :  { %v804_v13 = vpop.f32.mrb[7].mxu0  ;;  %v527_v14 = vpop.f32.mrb[4].mxu1 }
 0x102   :  { %v746_v15 = vpack.c.bf16 %v574_v10, %v573_v9  ;;  %v805_v16 = vadd.f32 %v804_v13, %v803_v12  ;;  %v440_v17 = vadd.f32 %v802_v11, %v1095_v58  ;;  %v529_v18 = vpop.f32.mrb[5].mxu1 }
 0x103   :  { %v530_v19 = vpop.f32.mrb[6].mxu1 }
 0x104   :  { %747 = vst [vmem:[%s1134_s3] sm:$0xff] %v746_v15   ;;  %v528_v20 = vadd.f32 %v527_v14, %v440_v17  ;;  %v443_v21 = vadd.f32 %v805_v16, %v1095_v58  ;;  %v532_v22 = vpop.f32.mrb[7].mxu1 }
 0x106   :  { %v531_v23 = vadd.f32 %v530_v19, %v443_v21  ;;  %v806_v24 = vpop.f32.mrb[8].mxu0  ;;  %v575_v26 = vmax.f32 %v528_v20, 0.0 }
 0x107   :  { %v807_v25 = vpop.f32.mrb[9].mxu0 }
 0x108   :  { %v576_v27 = vmax.f32 %v531_v23, 0.0  ;;  %v808_v28 = vadd.f32 %v807_v25, %v806_v24  ;;  %v809_v29 = vpop.f32.mrb[10].mxu0 }
 0x109   :  { %v810_v30 = vpop.f32.mrb[11].mxu0  ;;  %v535_v31 = vpop.f32.mrb[8].mxu1 }
 0x10a   :  { %v751_v32 = vpack.c.bf16 %v576_v27, %v575_v26  ;;  %v811_v33 = vadd.f32 %v810_v30, %v809_v29  ;;  %v448_v34 = vadd.f32 %v808_v28, %v1095_v58  ;;  %v537_v35 = vpop.f32.mrb[9].mxu1 }
 0x10b   :  { %v538_v36 = vpop.f32.mrb[10].mxu1 }
 0x10c   :  { %773 = vst [vmem:[%s1134_s3 + $0x8] sm:$0xff] %v751_v32   ;;  %v536_v37 = vadd.f32 %v535_v31, %v448_v34  ;;  %v451_v38 = vadd.f32 %v811_v33, %v1095_v58  ;;  %v540_v39 = vpop.f32.mrb[11].mxu1 }
 0x10e   :  { %v539_v40 = vadd.f32 %v538_v36, %v451_v38  ;;  %v812_v41 = vpop.f32.mrb[12].mxu0  ;;  %v577_v43 = vmax.f32 %v536_v37, 0.0 }
 0x10f   :  { %v813_v42 = vpop.f32.mrb[13].mxu0 }
 0x110   :  { %v578_v44 = vmax.f32 %v539_v40, 0.0  ;;  %v814_v45 = vadd.f32 %v813_v42, %v812_v41  ;;  %v815_v46 = vpop.f32.mrb[14].mxu0 }
 0x111   :  { %v816_v47 = vpop.f32.mrb[15].mxu0  ;;  %v543_v48 = vpop.f32.mrb[12].mxu1 }
 0x112   :  { %v756_v49 = vpack.c.bf16 %v578_v44, %v577_v43  ;;  %v817_v50 = vadd.f32 %v816_v47, %v815_v46  ;;  %v456_v51 = vadd.f32 %v814_v45, %v1095_v58  ;;  %v545_v52 = vpop.f32.mrb[13].mxu1 }
 0x113   :  { %v546_v53 = vpop.f32.mrb[14].mxu1 }
 0x114   :  { %774 = vst [vmem:[%s1134_s3 + $0x10] sm:$0xff] %v756_v49   ;;  %v544_v54 = vadd.f32 %v543_v48, %v456_v51  ;;  %v459_v55 = vadd.f32 %v817_v50, %v1095_v58  ;;  %v548_v56 = vpop.f32.mrb[15].mxu1 }
 0x116   :  { %v547_v57 = vadd.f32 %v546_v53, %v459_v55  ;;  %v818_v59 = vpop.f32.mrb[16].mxu0  ;;  %v579_v61 = vmax.f32 %v544_v54, 0.0 }
 0x117   :  { %v819_v60 = vpop.f32.mrb[17].mxu0 }
 0x118   :  { %v580_v62 = vmax.f32 %v547_v57, 0.0  ;;  %v820_v63 = vadd.f32 %v819_v60, %v818_v59  ;;  %v821_v0 = vpop.f32.mrb[18].mxu0 }
 0x119   :  { %v822_v1 = vpop.f32.mrb[19].mxu0  ;;  %v551_v2 = vpop.f32.mrb[16].mxu1 }
 0x11a   :  { %v761_v3 = vpack.c.bf16 %v580_v62, %v579_v61  ;;  %v823_v4 = vadd.f32 %v822_v1, %v821_v0  ;;  %v464_v5 = vadd.f32 %v820_v63, %v1095_v58  ;;  %v553_v6 = vpop.f32.mrb[17].mxu1 }
 0x11b   :  { %v554_v7 = vpop.f32.mrb[18].mxu1 }
 0x11c   :  { %775 = vst [vmem:[%s1134_s3 + $0x18] sm:$0xff] %v761_v3   ;;  %v552_v8 = vadd.f32 %v551_v2, %v464_v5  ;;  %v467_v9 = vadd.f32 %v823_v4, %v1095_v58  ;;  %v556_v10 = vpop.f32.mrb[19].mxu1 }
 0x11e   :  { %v555_v11 = vadd.f32 %v554_v7, %v467_v9  ;;  %v824_v12 = vpop.f32.mrb[20].mxu0  ;;  %v581_v14 = vmax.f32 %v552_v8, 0.0 }
 0x11f   :  { %v825_v13 = vpop.f32.mrb[21].mxu0 }
 0x120   :  { %v582_v15 = vmax.f32 %v555_v11, 0.0  ;;  %v826_v16 = vadd.f32 %v825_v13, %v824_v12  ;;  %v827_v17 = vpop.f32.mrb[22].mxu0 }
 0x121   :  { %v828_v18 = vpop.f32.mrb[23].mxu0  ;;  %v559_v19 = vpop.f32.mrb[20].mxu1 }
 0x122   :  { %v766_v20 = vpack.c.bf16 %v582_v15, %v581_v14  ;;  %v829_v21 = vadd.f32 %v828_v18, %v827_v17  ;;  %v472_v22 = vadd.f32 %v826_v16, %v1095_v58  ;;  %v561_v23 = vpop.f32.mrb[21].mxu1 }
 0x123   :  { %v562_v24 = vpop.f32.mrb[22].mxu1 }
 0x124   :  { %776 = vst [vmem:[%s1134_s3 + $0x20] sm:$0xff] %v766_v20   ;;  %v560_v25 = vadd.f32 %v559_v19, %v472_v22  ;;  %v475_v26 = vadd.f32 %v829_v21, %v1095_v58  ;;  %v564_v27 = vpop.f32.mrb[23].mxu1 }
 0x126   :  { %v563_v28 = vadd.f32 %v562_v24, %v475_v26  ;;  %v830_v29 = vpop.f32.mrb[24].mxu0  ;;  %v583_v31 = vmax.f32 %v560_v25, 0.0 }
 0x127   :  { %v831_v30 = vpop.f32.mrb[25].mxu0 }
 0x128   :  { %v584_v32 = vmax.f32 %v563_v28, 0.0  ;;  %v832_v33 = vadd.f32 %v831_v30, %v830_v29  ;;  %v833_v34 = vpop.f32.mrb[26].mxu0 }
 0x129   :  { %v834_v35 = vpop.f32.mrb[27].mxu0  ;;  %v567_v36 = vpop.f32.mrb[24].mxu1 }
 0x12a   :  { %v771_v37 = vpack.c.bf16 %v584_v32, %v583_v31  ;;  %v480_v38 = vadd.f32 %v832_v33, %v1095_v58  ;;  %v569_v39 = vpop.f32.mrb[25].mxu1 }
 0x12b   :  { %v570_v40 = vpop.f32.mrb[26].mxu1 }
 0x12c   :  { %777 = vst [vmem:[%s1134_s3 + $0x28] sm:$0xff] %v771_v37   ;;  %v568_v41 = vadd.f32 %v567_v36, %v480_v38  ;;  %v571_v42 = vpop.f32.mrb[27].mxu1 }
 0x12e   :  { %v585_v43 = vmax.f32 %v568_v41, 0.0 }
 0x130   :  { %v742_v44 = vpack.c.bf16 %v585_v43, %v585_v43 }
 0x132   :  { %651 = vst [vmem:[%s1134_s3 + $0x30] sm:$0x1] %v742_v44 }

// kernel: _forward.5
= control target key start
LH: loop header
LB: loop body
LE: loop exit
PB: predicated region body
PF: predicated region fallthrough
CT: control target
= control target key end

     0   :  { %v233_v29 = vlaneseq  ;;  %v1746_v35 = vmov 1966171168   ;;  %s2140_s0 = inlined_call_operand.vmem [shape: bf16[2,1568], index: 0, kind: input, shape index: {}]   ;;  %s2141_s1 = inlined_call_operand.vmem [shape: bf16[1568,128], index: 1, kind: input, shape index: {}]   ;;  %s2142_s2 = inlined_call_operand.vmem [shape: f32[1,128], index: 2, kind: input, shape index: {}]   ;;  %s2143_s3 = inlined_call_operand.vmem [shape: bf16[128,128], index: 3, kind: input, shape index: {}]   ;;  %s2144_s4 = inlined_call_operand.vmem [shape: f32[1,128], index: 4, kind: input, shape index: {}]   ;;  %s2145_s5 = inlined_call_operand.hbm [shape: f32[2,128], index: 5, kind: output, shape index: {}]  }
   0x1   :  { %v1614_v0 = vld [vmem:[%s2141_s1 + $0x40] sm:$0xff]   ;;  %v1618_v4 = vld [vmem:[%s2141_s1 + $0x48] sm:$0xff]   ;;  %v1622_v8 = vld [vmem:[%s2141_s1 + $0x50] sm:$0xff]   ;;  %v231_v36 = vunpack.c.l.s4 %v1746_v35 }
   0x2   :  { %v1615_v1 = vld [vmem:[%s2141_s1] sm:$0xff]   ;;  %1438 = vmatprep.subr.bf16.mxu0 %v1614_v0  ;;  %v1619_v5 = vld [vmem:[%s2141_s1 + $0x8] sm:$0xff]   ;;  %v1623_v9 = vld [vmem:[%s2141_s1 + $0x10] sm:$0xff]   ;;  %v234_v33 = vshrl.u32 %v233_v29, 7 }
   0x3   :  { %v1616_v2 = vld [vmem:[%s2141_s1 + $0xc0] sm:$0xff]   ;;  %1439 = vmatpush3.bf16.msra.mxu0 %v1615_v1  ;;  %v1620_v6 = vld [vmem:[%s2141_s1 + $0xc8] sm:$0xff]   ;;  %v1624_v10 = vld [vmem:[%s2141_s1 + $0xd0] sm:$0xff]   ;;  %v232_v39 = vunpack.c.0.s8 %v231_v36 }
   0x4   :  { %v1617_v3 = vld [vmem:[%s2141_s1 + $0x80] sm:$0xff]   ;;  %1460 = vmatprep.subr.bf16.mxu1 %v1616_v2  ;;  %1440 = vmatprep.subr.bf16.mxu0 %v1618_v4  ;;  %v1621_v7 = vld [vmem:[%s2141_s1 + $0x88] sm:$0xff]   ;;  %v1625_v11 = vld [vmem:[%s2141_s1 + $0x90] sm:$0xff]  }
   0x5   :  { %1461 = vmatpush3.bf16.msra.mxu1 %v1617_v3  ;;  %v1626_v12 = vld [vmem:[%s2141_s1 + $0x58] sm:$0xff]   ;;  %v1630_v16 = vld [vmem:[%s2141_s1 + $0x60] sm:$0xff]   ;;  %v1634_v20 = vld [vmem:[%s2141_s1 + $0x68] sm:$0xff]   ;;  %v1885_v41 = vsub.s32 %v232_v39, %v234_v33 }
   0x6   :  { %1462 = vmatprep.subr.bf16.mxu1 %v1620_v6  ;;  %v1627_v13 = vld [vmem:[%s2141_s1 + $0x18] sm:$0xff]   ;;  %v1631_v17 = vld [vmem:[%s2141_s1 + $0x20] sm:$0xff]   ;;  %v1635_v21 = vld [vmem:[%s2141_s1 + $0x28] sm:$0xff]  }
   0x7   :  { %1441 = vmatpush3.bf16.msra.mxu0 %v1619_v5  ;;  %v1628_v14 = vld [vmem:[%s2141_s1 + $0xd8] sm:$0xff]   ;;  %v1632_v18 = vld [vmem:[%s2141_s1 + $0xe0] sm:$0xff]   ;;  %v1636_v22 = vld [vmem:[%s2141_s1 + $0xe8] sm:$0xff]  }
   0x8   :  { %1442 = vmatprep.subr.bf16.mxu0 %v1622_v8  ;;  %v1629_v15 = vld [vmem:[%s2141_s1 + $0x98] sm:$0xff]   ;;  %v1633_v19 = vld [vmem:[%s2141_s1 + $0xa0] sm:$0xff]   ;;  %v1637_v23 = vld [vmem:[%s2141_s1 + $0xa8] sm:$0xff]  }
   0x9   :  { %1463 = vmatpush3.bf16.msra.mxu1 %v1621_v7  ;;  %v1638_v24 = vld [vmem:[%s2141_s1 + $0x70] sm:$0xff]   ;;  %v1642_v28 = vld [vmem:[%s2141_s1 + $0x78] sm:$0xff]   ;;  %v1647_v34 = vld [vmem:[%s2141_s1 + $0x140] sm:$0xff]  }
   0xa   :  { %1464 = vmatprep.subr.bf16.mxu1 %v1624_v10  ;;  %v1639_v25 = vld [vmem:[%s2141_s1 + $0x30] sm:$0xff]   ;;  %v1643_v30 = vld [vmem:[%s2141_s1 + $0x38] sm:$0xff]   ;;  %v22_v37 = vld [vmem:[%s2140_s0] sm:$0xff] }
   0xb   :  { %1443 = vmatpush3.bf16.msra.mxu0 %v1623_v9  ;;  %v1640_v26 = vld [vmem:[%s2141_s1 + $0xf0] sm:$0xff]   ;;  %v1644_v31 = vld [vmem:[%s2141_s1 + $0xf8] sm:$0xff]   ;;  %v229_v38 = vcombine.high %v22_v37, %v22_v37  ;;  %v1649_v40 = vld [vmem:[%s2141_s1 + $0x1c0] sm:$0xff]   ;;  %v236_v42 = vrot.slane %v22_v37, %v1885_v41 }
   0xc   :  { %1444 = vmatprep.subr.bf16.mxu0 %v1626_v12  ;;  %v1641_v27 = vld [vmem:[%s2141_s1 + $0xb0] sm:$0xff]   ;;  %v1645_v32 = vld [vmem:[%s2141_s1 + $0xb8] sm:$0xff]   ;;  %v1648_v47 = vld [vmem:[%s2141_s1 + $0x100] sm:$0xff]  }
   0xd   :  { %1465 = vmatpush3.bf16.msra.mxu1 %v1625_v11  ;;  %v1889_v43 = vrot.slane %v229_v38, %v1885_v41  ;;  %v244_v44 = vcombine.high %v236_v42, %v236_v42  ;;  %v252_v45 = vrot.slane %v236_v42, %v1885_v41  ;;  %v1650_v49 = vld [vmem:[%s2141_s1 + $0x180] sm:$0xff]   ;;  %v1651_v52 = vld [vmem:[%s2141_s1 + $0x148] sm:$0xff]   ;;  %v1655_v58 = vld [vmem:[%s2141_s1 + $0x150] sm:$0xff]  }
   0xe   :  { %1466 = vmatprep.subr.bf16.mxu1 %v1628_v14  ;;  %v1652_v54 = vld [vmem:[%s2141_s1 + $0x108] sm:$0xff]   ;;  %v1656_v59 = vld [vmem:[%s2141_s1 + $0x110] sm:$0xff]   ;;  %v1659_v62 = vld [vmem:[%s2141_s1 + $0x158] sm:$0xff]  }
   0xf   :  { %1445 = vmatpush3.bf16.msra.mxu0 %v1627_v13  ;;  %v245_v46 = vcombine.high %v1889_v43, %v1889_v43  ;;  %v266_v48 = vrot.slane %v244_v44, %v1885_v41  ;;  %v274_v51 = vcombine.high %v252_v45, %v252_v45  ;;  %v1653_v55 = vld [vmem:[%s2141_s1 + $0x1c8] sm:$0xff]   ;;  %v1657_v60 = vld [vmem:[%s2141_s1 + $0x1d0] sm:$0xff]   ;;  %v1660_v63 = vld [vmem:[%s2141_s1 + $0x118] sm:$0xff]  }
  0x10   :  { %1446 = vmatprep.subr.bf16.mxu0 %v1630_v16  ;;  %v1654_v57 = vld [vmem:[%s2141_s1 + $0x188] sm:$0xff]   ;;  %v1658_v61 = vld [vmem:[%s2141_s1 + $0x190] sm:$0xff]   ;;  %v1661_v0 = vld [vmem:[%s2141_s1 + $0x1d8] sm:$0xff]  }
  0x11   :  { %1467 = vmatpush3.bf16.msra.mxu1 %v1629_v15  ;;  %v273_v50 = vrot.slane %v245_v46, %v1885_v41  ;;  %953 = vmatprep.mubr.bf16.mxu0 %v266_v48  ;;  %v276_v53 = vcombine.high %v266_v48, %v266_v48  ;;  %v1662_v1 = vld [vmem:[%s2141_s1 + $0x198] sm:$0xff]   ;;  %v1663_v2 = vld [vmem:[%s2141_s1 + $0x160] sm:$0xff]   ;;  %v1667_v6 = vld [vmem:[%s2141_s1 + $0x168] sm:$0xff]  }
  0x12   :  { %1468 = vmatprep.subr.bf16.mxu1 %v1632_v18  ;;  %v1664_v3 = vld [vmem:[%s2141_s1 + $0x120] sm:$0xff]   ;;  %v1668_v7 = vld [vmem:[%s2141_s1 + $0x128] sm:$0xff]   ;;  %v1671_v10 = vld [vmem:[%s2141_s1 + $0x170] sm:$0xff]   ;;  %v259_v18 = vrot.slane %v1889_v43, %v1885_v41 }
  0x13   :  { %1447 = vmatpush3.bf16.msra.mxu0 %v1631_v17  ;;  %v277_v56 = vcombine.high %v273_v50, %v273_v50  ;;  %993 = vmatprep.mubr.bf16.mxu1 %v276_v53  ;;  %v1665_v4 = vld [vmem:[%s2141_s1 + $0x1e0] sm:$0xff]   ;;  %v1669_v8 = vld [vmem:[%s2141_s1 + $0x1e8] sm:$0xff]   ;;  %v1672_v11 = vld [vmem:[%s2141_s1 + $0x130] sm:$0xff]  }
  0x14   :  { %1448 = vmatprep.subr.bf16.mxu0 %v1634_v20  ;;  %v1666_v5 = vld [vmem:[%s2141_s1 + $0x1a0] sm:$0xff]   ;;  %v1670_v9 = vld [vmem:[%s2141_s1 + $0x1a8] sm:$0xff]   ;;  %v1673_v12 = vld [vmem:[%s2141_s1 + $0x1f0] sm:$0xff]  }
  0x15   :  { %1469 = vmatpush3.bf16.msra.mxu1 %v1633_v19  ;;  %v1674_v13 = vld [vmem:[%s2141_s1 + $0x1b0] sm:$0xff]   ;;  %v1675_v14 = vld [vmem:[%s2141_s1 + $0x178] sm:$0xff]   ;;  %v1679_v19 = vld [vmem:[%s2141_s1 + $0x240] sm:$0xff]  }
  0x16   :  { %1470 = vmatprep.subr.bf16.mxu1 %v1636_v22  ;;  %v1676_v15 = vld [vmem:[%s2141_s1 + $0x138] sm:$0xff]   ;;  %v1680_v20 = vld [vmem:[%s2141_s1 + $0x200] sm:$0xff]   ;;  %v1688_v29 = vld [vmem:[%s2141_s1 + $0x210] sm:$0xff]  }
  0x17   :  { %1449 = vmatpush3.bf16.msra.mxu0 %v1635_v21  ;;  %v1677_v16 = vld [vmem:[%s2141_s1 + $0x1f8] sm:$0xff]   ;;  %v1681_v21 = vld [vmem:[%s2141_s1 + $0x2c0] sm:$0xff]   ;;  %v1700_v42 = vld [vmem:[%s2141_s1 + $0x228] sm:$0xff]  }
  0x18   :  { %1450 = vmatprep.subr.bf16.mxu0 %v1638_v24  ;;  %v1678_v17 = vld [vmem:[%s2141_s1 + $0x1b8] sm:$0xff]   ;;  %v1682_v22 = vld [vmem:[%s2141_s1 + $0x280] sm:$0xff]   ;;  %v1683_v24 = vld [vmem:[%s2141_s1 + $0x248] sm:$0xff]  }
  0x19   :  { %1471 = vmatpush3.bf16.msra.mxu1 %v1637_v23  ;;  %v275_v23 = vcombine.high %v259_v18, %v259_v18  ;;  %v1692_v33 = vld [vmem:[%s2141_s1 + $0x218] sm:$0xff]   ;;  %v1695_v36 = vld [vmem:[%s2141_s1 + $0x260] sm:$0xff]   ;;  %v1701_v43 = vld [vmem:[%s2141_s1 + $0x2e8] sm:$0xff]  }
  0x1a   :  { %1472 = vmatprep.subr.bf16.mxu1 %v1640_v26  ;;  %v1685_v26 = vld [vmem:[%s2141_s1 + $0x2c8] sm:$0xff]   ;;  %v1694_v35 = vld [vmem:[%s2141_s1 + $0x298] sm:$0xff]   ;;  %v1696_v37 = vld [vmem:[%s2141_s1 + $0x220] sm:$0xff]  }
  0x1b   :  { %1451 = vmatpush3.bf16.msra.mxu0 %v1639_v25  ;;  %v1684_v25 = vld [vmem:[%s2141_s1 + $0x208] sm:$0xff]   ;;  %v1697_v38 = vld [vmem:[%s2141_s1 + $0x2e0] sm:$0xff]   ;;  %v1705_v48 = vld [vmem:[%s2141_s1 + $0x2f0] sm:$0xff]  }
  0x1c   :  { %1452 = vmatprep.subr.bf16.mxu0 %v1642_v28  ;;  %v1687_v28 = vld [vmem:[%s2141_s1 + $0x250] sm:$0xff]   ;;  %v1698_v39 = vld [vmem:[%s2141_s1 + $0x2a0] sm:$0xff]   ;;  %v1702_v44 = vld [vmem:[%s2141_s1 + $0x2a8] sm:$0xff]  }
  0x1d   :  { %1473 = vmatpush3.bf16.msra.mxu1 %v1641_v27  ;;  %v1686_v27 = vld [vmem:[%s2141_s1 + $0x288] sm:$0xff]   ;;  %v1709_v53 = vld [vmem:[%s2141_s1 + $0x2f8] sm:$0xff]  }
  0x1e   :  { %1474 = vmatprep.subr.bf16.mxu1 %v1644_v31  ;;  %v1690_v31 = vld [vmem:[%s2141_s1 + $0x290] sm:$0xff]   ;;  %v23_v46 = vld [vmem:[%s2140_s0 + $0x8] sm:$0x1f] }
  0x1f   :  { %1453 = vmatpush3.bf16.msra.mxu0 %v1643_v30  ;;  %v1689_v30 = vld [vmem:[%s2141_s1 + $0x2d0] sm:$0xff]  }
  0x20   :  { %1482 = vmatprep.subr.bf16.mxu0 %v1647_v34  ;;  %v1693_v34 = vld [vmem:[%s2141_s1 + $0x2d8] sm:$0xff]  }
  0x21   :  { %1475 = vmatpush3.bf16.msra.mxu1 %v1645_v32  ;;  %v1691_v32 = vld [vmem:[%s2141_s1 + $0x258] sm:$0xff]  }
  0x22   :  { %1504 = vmatprep.subr.bf16.mxu1 %v1649_v40  ;;  %954 = vmatmul.mubr.bf16.vlgmr.msra.gmra.mrb[0].mxu0 %v252_v45  ;;  %v1699_v40 = vld [vmem:[%s2141_s1 + $0x268] sm:$0xff]   ;;  %v1703_v45 = vld [vmem:[%s2141_s1 + $0x270] sm:$0xff]  }
  0x23   :  { %1483 = vmatpush3.bf16.msra.mxu0 %v1648_v47  ;;  %1033 = vmatprep.mubr.bf16.mxu0 %v273_v50  ;;  %v1704_v47 = vld [vmem:[%s2141_s1 + $0x230] sm:$0xff]   ;;  %v1707_v50 = vld [vmem:[%s2141_s1 + $0x278] sm:$0xff]  }
  0x24   :  { %994 = vmatmul.mubr.bf16.vlgmr.msra.gmra.mrb[0].mxu1 %v274_v51  ;;  %1484 = vmatprep.subr.bf16.mxu0 %v1651_v52  ;;  %v1706_v51 = vld [vmem:[%s2141_s1 + $0x2b0] sm:$0xff]  }
  0x25   :  { %1505 = vmatpush3.bf16.msra.mxu1 %v1650_v49  ;;  %1073 = vmatprep.mubr.bf16.mxu1 %v277_v56  ;;  %v285_v49 = vrot.slane %v23_v46, %v1885_v41 }
  0x26   :  { %1506 = vmatprep.subr.bf16.mxu1 %v1653_v55 }
  0x27   :  { %1485 = vmatpush3.bf16.msra.mxu0 %v1652_v54  ;;  %v293_v52 = vcombine.high %v285_v49, %v285_v49  ;;  %v1708_v54 = vld [vmem:[%s2141_s1 + $0x238] sm:$0xff]  }
  0x28   :  { %1486 = vmatprep.subr.bf16.mxu0 %v1655_v58 }
  0x29   :  { %1507 = vmatpush3.bf16.msra.mxu1 %v1654_v57  ;;  %v314_v55 = vrot.slane %v293_v52, %v1885_v41  ;;  %v300_v57 = vrot.slane %v285_v49, %v1885_v41 }
  0x2a   :  { %1508 = vmatprep.subr.bf16.mxu1 %v1657_v60 }
  0x2b   :  { %1487 = vmatpush3.bf16.msra.mxu0 %v1656_v59  ;;  %v316_v56 = vcombine.high %v314_v55, %v314_v55 }
  0x2c   :  { %1488 = vmatprep.subr.bf16.mxu0 %v1659_v62 }
  0x2d   :  { %1509 = vmatpush3.bf16.msra.mxu1 %v1658_v61 }
  0x2e   :  { %1510 = vmatprep.subr.bf16.mxu1 %v1661_v0 }
  0x2f   :  { %1489 = vmatpush3.bf16.msra.mxu0 %v1660_v63 }
  0x30   :  { %1490 = vmatprep.subr.bf16.mxu0 %v1663_v2 }
  0x31   :  { %1511 = vmatpush3.bf16.msra.mxu1 %v1662_v1 }
  0x32   :  { %1512 = vmatprep.subr.bf16.mxu1 %v1665_v4 }
  0x33   :  { %1491 = vmatpush3.bf16.msra.mxu0 %v1664_v3 }
  0x34   :  { %1492 = vmatprep.subr.bf16.mxu0 %v1667_v6 }
  0x35   :  { %1513 = vmatpush3.bf16.msra.mxu1 %v1666_v5 }
  0x36   :  { %1514 = vmatprep.subr.bf16.mxu1 %v1669_v8 }
  0x37   :  { %1493 = vmatpush3.bf16.msra.mxu0 %v1668_v7 }
  0x38   :  { %1494 = vmatprep.subr.bf16.mxu0 %v1671_v10 }
  0x39   :  { %1515 = vmatpush3.bf16.msra.mxu1 %v1670_v9 }
  0x3a   :  { %1516 = vmatprep.subr.bf16.mxu1 %v1673_v12 }
  0x3b   :  { %1495 = vmatpush3.bf16.msra.mxu0 %v1672_v11 }
  0x3c   :  { %1496 = vmatprep.subr.bf16.mxu0 %v1675_v14 }
  0x3d   :  { %1517 = vmatpush3.bf16.msra.mxu1 %v1674_v13 }
  0x3e   :  { %1518 = vmatprep.subr.bf16.mxu1 %v1677_v16 }
  0x3f   :  { %1497 = vmatpush3.bf16.msra.mxu0 %v1676_v15 }
  0x40   :  { %1526 = vmatprep.subr.bf16.mxu0 %v1679_v19 }
  0x41   :  { %1519 = vmatpush3.bf16.msra.mxu1 %v1678_v17 }
  0x42   :  { %1034 = vmatmul.mubr.bf16.vlgmr.msra.gmra.mrb[4].mxu0 %v259_v18  ;;  %1548 = vmatprep.subr.bf16.mxu1 %v1681_v21 }
  0x43   :  { %1527 = vmatpush3.bf16.msra.mxu0 %v1680_v20  ;;  %1113 = vmatprep.mubr.bf16.mxu0 %v314_v55 }
  0x44   :  { %1074 = vmatmul.mubr.bf16.vlgmr.msra.gmra.mrb[4].mxu1 %v275_v23  ;;  %1528 = vmatprep.subr.bf16.mxu0 %v1683_v24 }
  0x45   :  { %1549 = vmatpush3.bf16.msra.mxu1 %v1682_v22 }
  0x46   :  { %1550 = vmatprep.subr.bf16.mxu1 %v1685_v26 }
  0x47   :  { %1529 = vmatpush3.bf16.msra.mxu0 %v1684_v25 }
  0x48   :  { %1530 = vmatprep.subr.bf16.mxu0 %v1687_v28 }
  0x49   :  { %1551 = vmatpush3.bf16.msra.mxu1 %v1686_v27 }
  0x4a   :  { %1552 = vmatprep.subr.bf16.mxu1 %v1689_v30 }
  0x4b   :  { %1531 = vmatpush3.bf16.msra.mxu0 %v1688_v29 }
  0x4c   :  { %1532 = vmatprep.subr.bf16.mxu0 %v1691_v32 }
  0x4d   :  { %1553 = vmatpush3.bf16.msra.mxu1 %v1690_v31 }
  0x4e   :  { %1554 = vmatprep.subr.bf16.mxu1 %v1693_v34 }
  0x4f   :  { %1533 = vmatpush3.bf16.msra.mxu0 %v1692_v33 }
  0x50   :  { %1534 = vmatprep.subr.bf16.mxu0 %v1695_v36 }
  0x51   :  { %1555 = vmatpush3.bf16.msra.mxu1 %v1694_v35 }
  0x52   :  { %1556 = vmatprep.subr.bf16.mxu1 %v1697_v38 }
  0x53   :  { %1535 = vmatpush3.bf16.msra.mxu0 %v1696_v37 }
  0x54   :  { %1536 = vmatprep.subr.bf16.mxu0 %v1699_v40 }
  0x55   :  { %1557 = vmatpush3.bf16.msra.mxu1 %v1698_v39 }
  0x56   :  { %1558 = vmatprep.subr.bf16.mxu1 %v1701_v43 }
  0x57   :  { %1537 = vmatpush3.bf16.msra.mxu0 %v1700_v42 }
  0x58   :  { %1538 = vmatprep.subr.bf16.mxu0 %v1703_v45 }
  0x59   :  { %1559 = vmatpush3.bf16.msra.mxu1 %v1702_v44 }
  0x5a   :  { %1560 = vmatprep.subr.bf16.mxu1 %v1705_v48 }
  0x5b   :  { %1539 = vmatpush3.bf16.msra.mxu0 %v1704_v47 }
  0x5c   :  { %1540 = vmatprep.subr.bf16.mxu0 %v1707_v50 }
  0x5d   :  { %10 = vsyncpa [#allocation3], 0  ;;  %1561 = vmatpush3.bf16.msra.mxu1 %v1706_v51  ;;  %v1710_v58 = vld [vmem:[%s2141_s1 + $0x2b8] sm:$0xff]   ;;  %1153 = vmatprep.mubr.bf16.mxu1 %v316_v56  ;;  %v278_v59 = vcombine.high %v23_v46, %v23_v46  ;;  %v1712_v60 = vld [vmem:[%s2141_s1 + $0x300] sm:$0xff]   ;;  %v1747_v61 = vmov 0.0   ;;  %v315_v62 = vcombine.high %v300_v57, %v300_v57  ;;  %vm1748_vm0 = vmmov 0  }
  0x5e   :  { %1562 = vmatprep.subr.bf16.mxu1 %v1709_v53  ;;  %v1713_v0 = vld [vmem:[%s2141_s1 + $0x308] sm:$0xff]   ;;  %vm917_vm1 = vcmask 261120   ;;  %v1714_v2 = vld [vmem:[%s2143_s3] sm:$0xff]   ;;  %v1716_v4 = vld [vmem:[%s2143_s3 + $0x10] sm:$0xff]   ;;  %s1749_s8 = smov [#allocation2]  }
  0x5f   :  { %1541 = vmatpush3.bf16.msra.mxu0 %v1708_v54  ;;  %v292_v63 = vrot.slane %v278_v59, %v1885_v41  ;;  %v1715_v3 = vld [vmem:[%s2143_s3 + $0x8] sm:$0xff]   ;;  %v1718_v5 = vld [vmem:[%s2143_s3 + $0x20] sm:$0xff]   ;;  %v1720_v7 = vld [vmem:[%s2143_s3 + $0x30] sm:$0xff]   ;;  %s1321_s9 = sshll.u32 %s1749_s8, 4  ;;  %s1322_s9 = int_to_ptr.vmem [resolvable:$true] %s1321_s9 }
  0x60   :  { %1582 = vmatprep.subr.bf16.mxu0 %v1747_v61  ;;  %v1719_v6 = vld [vmem:[%s2143_s3 + $0x28] sm:$0xff]   ;;  %v1721_v8 = vld [vmem:[%s2143_s3 + $0x38] sm:$0xff]   ;;  %v1329_v10 = vld [vmem:[%s2142_s2] ss:$0 sm:$0xff]  ;;  %s1722_s10 = scalar_lea.vmem %s1322_s9, 32  ;;  %p1727_p1 = scmp.lt.s32.totalorder %s1322_s9, %s1322_s9 }
  0x61   :  { %1563 = vmatpush3.bf16.msra.mxu1 %v1710_v58  ;;  %v307_v1 = vrot.slane %v292_v63, %v1885_v41  ;;  %v1717_v41 = vld [vmem:[%s2143_s3 + $0x18] sm:$0xff]   ;;  %v1429_v54 = vld [vmem:[%s2144_s4] ss:$0 sm:$0xff]  ;;  %p1723_p0 = scmp.ne.s32.totalorder %s1322_s9, %s1722_s10  ;;  %p1728_p2 = scmp.lt.s32.totalorder %s1722_s10, %s1722_s10 }
  0x62   :  { %1114 = vmatmul.mubr.bf16.vlgmr.msra.gmra.mrb[8].mxu0 %v300_v57  ;;  %1590 = vmatprep.subr.bf16.mxu1 %v1747_v61 }
  0x63   :  { %1583 = vmatpush3.bf16.msra.mxu0 %v1712_v60  ;;  %1586 = vmatprep.mubr.msk.bf16.mxu0 %vm1748_vm0, %v1747_v61  ;;  %p1729_p3 = por %p1728_p2, %p1727_p1 }
  0x64   :  { %1154 = vmatmul.mubr.bf16.vlgmr.msra.gmra.mrb[8].mxu1 %v315_v62  ;;  %1584 = vmatprep.subr.bf16.mxu0 %v1747_v61 }
  0x65   :  { %1606 = vmatprep.mubr.msk.bf16.mxu1 %vm1748_vm0, %v1747_v61  ;;  %1591 = vmatpush3.bf16.msra.mxu1 %v1714_v2  ;;  %p1730_p4 = pnand %p1729_p3, %p1723_p0 }
  0x66   :  { %1592 = vmatprep.subr.bf16.mxu1 %v1747_v61 }
  0x67   :  { %1585 = vmatpush3.bf16.msra.mxu0 %v1713_v0 }
  0x69   :  { %1593 = vmatpush3.bf16.msra.mxu1 %v1715_v3 }
  0x6a   :  { %1587 = vmatmul.mubr.msk.bf16.vlgmr.msra.gmra.mrb[12].mxu0 %vm917_vm1, %v307_v1  ;;  %1594 = vmatprep.subr.bf16.mxu1 %v1747_v61 }
  0x6d   :  { %1595 = vmatpush3.bf16.msra.mxu1 %v1716_v4 }
  0x6e   :  { %1596 = vmatprep.subr.bf16.mxu1 %v1747_v61 }
  0x71   :  { %1597 = vmatpush3.bf16.msra.mxu1 %v1717_v41 }
  0x72   :  { %1598 = vmatprep.subr.bf16.mxu1 %v1747_v61 }
  0x75   :  { %1599 = vmatpush3.bf16.msra.mxu1 %v1718_v5 }
  0x76   :  { %1600 = vmatprep.subr.bf16.mxu1 %v1747_v61 }
  0x79   :  { %1601 = vmatpush3.bf16.msra.mxu1 %v1719_v6 }
  0x7a   :  { %1602 = vmatprep.subr.bf16.mxu1 %v1747_v61 }
  0x7d   :  { %1603 = vmatpush3.bf16.msra.mxu1 %v1720_v7 }
  0x7e   :  { %1604 = vmatprep.subr.bf16.mxu1 %v1747_v61 }
  0x81   :  { %1605 = vmatpush3.bf16.msra.mxu1 %v1721_v8 }
  0xf5   :  { %v1454_v9 = vpop.f32.mrb[0].mxu0 }
  0xf6   :  { %v1455_v11 = vpop.f32.mrb[1].mxu0 }
  0xf7   :  { %v1456_v12 = vadd.f32 %v1455_v11, %v1454_v9  ;;  %v1457_v13 = vpop.f32.mrb[2].mxu0  ;;  %v1476_v14 = vpop.f32.mrb[0].mxu1 }
  0xf8   :  { %v1458_v15 = vpop.f32.mrb[3].mxu0  ;;  %v1477_v16 = vpop.f32.mrb[1].mxu1 }
  0xf9   :  { %v956_v17 = vadd.f32 %v1456_v12, %v1329_v10  ;;  %v1478_v18 = vadd.f32 %v1477_v16, %v1476_v14  ;;  %v1479_v19 = vpop.f32.mrb[2].mxu1 }
  0xfa   :  { %v1480_v20 = vpop.f32.mrb[3].mxu1 }
  0xfb   :  { %v996_v21 = vadd.f32 %v1478_v18, %v956_v17 }
 0x115   :  { %v1498_v22 = vpop.f32.mrb[4].mxu0 }
 0x116   :  { %v1499_v23 = vpop.f32.mrb[5].mxu0 }
 0x117   :  { %v1500_v24 = vadd.f32 %v1499_v23, %v1498_v22  ;;  %v1501_v25 = vpop.f32.mrb[6].mxu0  ;;  %v1520_v26 = vpop.f32.mrb[4].mxu1 }
 0x118   :  { %v1502_v27 = vpop.f32.mrb[7].mxu0  ;;  %v1521_v28 = vpop.f32.mrb[5].mxu1 }
 0x119   :  { %v1036_v29 = vadd.f32 %v1500_v24, %v996_v21  ;;  %v1522_v30 = vadd.f32 %v1521_v28, %v1520_v26  ;;  %v1523_v31 = vpop.f32.mrb[6].mxu1 }
 0x11a   :  { %v1524_v32 = vpop.f32.mrb[7].mxu1 }
 0x11b   :  { %v1076_v33 = vadd.f32 %v1522_v30, %v1036_v29 }
 0x135   :  { %v1542_v34 = vpop.f32.mrb[8].mxu0 }
 0x136   :  { %v1543_v35 = vpop.f32.mrb[9].mxu0 }
 0x137   :  { %v1544_v36 = vadd.f32 %v1543_v35, %v1542_v34  ;;  %v1564_v37 = vpop.f32.mrb[8].mxu1  ;;  %v1545_v38 = vpop.f32.mrb[10].mxu0 }
 0x138   :  { %v1565_v39 = vpop.f32.mrb[9].mxu1  ;;  %v1546_v40 = vpop.f32.mrb[11].mxu0 }
 0x139   :  { %v1116_v42 = vadd.f32 %v1544_v36, %v1076_v33  ;;  %v1566_v43 = vadd.f32 %v1565_v39, %v1564_v37  ;;  %v1567_v44 = vpop.f32.mrb[10].mxu1 }
 0x13a   :  { %v1568_v45 = vpop.f32.mrb[11].mxu1 }
 0x13b   :  { %v1156_v46 = vadd.f32 %v1566_v43, %v1116_v42 }
 0x13d   :  { %v1195_v47 = vpop.f32.mrb[12].mxu0 }
 0x13e   :  { %v1196_v48 = vadd.f32 %v1195_v47, %v1156_v46  ;;  %v1588_v49 = vpop.f32.mrb[13].mxu0 }
 0x13f   :  { %v1198_v50 = vpop.f32.mrb[14].mxu0 }
 0x140   :  { %v1201_v51 = vmax.f32 %v1196_v48, 0.0  ;;  %v1589_v52 = vpop.f32.mrb[15].mxu0 }
 0x142   :  { %v1202_v53 = vpack.c.bf16 %v1201_v51, %v1201_v51 }
 0x144   :  { %1607 = vmatmul.mubr.bf16.vlgmr.msra.gmra.mrb[12].mxu1 %v1202_v53 }
 0x217   :  { %v1308_v55 = vpop.f32.mrb[12].mxu1 }
 0x218   :  { %v1309_v56 = vadd.f32 %v1429_v54, %v1308_v55  ;;  %v1608_v57 = vpop.f32.mrb[13].mxu1 }
 0x219   :  { %v1311_v58 = vpop.f32.mrb[14].mxu1 }
 0x21a   :  { %1314 = vst [vmem:[#allocation2] sm:$0x3] %v1309_v56  ;;  %v1609_v59 = vpop.f32.mrb[15].mxu1 }
 0x21b   :  { %1733 = shalt.err (!%p1730_p4)
}
 0x21c   :  { %s1734_s4 = scalar_lea.hbm %s2145_s5, 32 }
 0x21d   :  { %p1735_p5 = scmp.ne.s32.totalorder %s2145_s5, %s1734_s4  ;;  %p1738_p6 = scmp.lt.u32.totalorder %s1734_s4, %s2145_s5 }
 0x21f   :  { %p1740_p7 = pnand %p1738_p6, %p1735_p5 }
 0x221   :  { %1743 = shalt.err (!%p1740_p7)
}
 0x222   :  { %1324 = dma.vmem_to_hbm [thread:$0]  %s1322_s9, 32, %s2145_s5, [#allocation3]  }
 0x223   :  { %1744 = dma.done.wait [#allocation3], 32  }
 0x224   :  { %1745 = vsyncadd [#allocation3], 4294967264 }
 0x225   :  { %1328 = vsyncpa [#allocation3], 1 }

</bundles_post_ra>
